<compile_context>
chip_gen: v6e
topology: v6e:2x2x1
jax: 0.10.0
libtpu: 0.0.40
codegen_flags: <defaults>
</compile_context>

<pallas_src>
import jax
import jax.numpy as jnp
from jax import lax
from jax.experimental import pallas as pl
from jax.experimental.pallas import tpu as pltpu


# ----------------------------------------------------------------------------
# Fused kernel: (folded) qkv projection + softmax attention + out projection
# ----------------------------------------------------------------------------
def _attn_fused_kernel(x_ref, w_ref, bo_ref, o_ref, kk_sc, v_sc):
    # x_ref : (C, HW)   channel-major input (HW on the 128-lane axis); the same
    #                   block stays resident across every query tile of this image
    # w_ref : (3, C, C) packed weights [ (scale*Wq)^T Wk , Wv , Wo ]
    # bo_ref: (C, 1)    to_out bias
    # o_ref : (C, TQ)   lane-dense output tile
    # kk_sc : (C, HW)   bf16 scratch: K' = M @ x      (computed once per image)
    # v_sc  : (C, HW)   bf16 scratch: V  = Wv @ x     (computed once per image)
    qi = pl.program_id(1)
    TQ = o_ref.shape[1]

    # --- per-image K'/V cache: compute once (qi == 0), reuse for all q tiles ---
    @pl.when(qi == 0)
    def _():
        x = x_ref[...].astype(jnp.float32)                                # (C, HW)
        kk_sc[...] = jnp.dot(w_ref[0], x,
                             preferred_element_type=jnp.float32).astype(kk_sc.dtype)
        v_sc[...] = jnp.dot(w_ref[1], x,
                            preferred_element_type=jnp.float32).astype(v_sc.dtype)

    # --- query tile straight from the resident channel-major block -------------
    if TQ % 128 == 0:
        start = pl.multiple_of(qi * TQ, 128)
    else:
        start = qi * TQ        # only reached when the qi axis has a single step
    xq = x_ref[:, pl.ds(start, TQ)].astype(jnp.float32)                   # (C, TQ)
    xq_t = jnp.transpose(xq)           # (TQ, C): tiny tile, XLU; avoids TN matmul

    # --- scores: s[tq, hw] = sum_c x[c, tq] * K'[c, hw]  (scale folded into K')
    s = jnp.dot(xq_t.astype(kk_sc.dtype), kk_sc[...],
                preferred_element_type=jnp.float32)                       # (TQ, HW)

    # --- softmax along lanes; exp overwrites s so only one (TQ,HW) f32 is live -
    m = jnp.max(s, axis=-1, keepdims=True)
    s = jnp.exp(s - m)
    l = jnp.sum(s, axis=-1, keepdims=True)
    p = (s * pl.reciprocal(l, approx=True)).astype(v_sc.dtype)            # bf16

    # --- attn @ V^T, kept transposed so the output store stays lane-dense ------
    # o[c, tq] = sum_hw V[c, hw] * p[tq, hw]   (NT contraction) -> (C, TQ)
    o = lax.dot_general(v_sc[...], p, (((1,), (1,)), ((), ())),
                        preferred_element_type=jnp.float32)               # (C, TQ)

    # --- to_out (1x1 conv + bias); Dropout = identity in eval mode -------------
    o_ref[...] = (jnp.dot(w_ref[2], o, preferred_element_type=jnp.float32)
                  + bo_ref[...]).astype(o_ref.dtype)


# ----------------------------------------------------------------------------
# Wrapper
# ----------------------------------------------------------------------------
def _vmem_capacity_bytes():
    """Per-core VMEM capacity; falls back to 64 MiB (v7x, smallest generation)."""
    try:
        info = pltpu.get_tpu_info()
        for name in ("vmem_capacity_bytes", "vmem_bytes", "vmem_size_bytes"):
            cap = getattr(info, name, None)
            if cap:
                return int(cap)
    except Exception:
        pass
    return 64 * 1024 * 1024


def _pick_tq(HW, C, budget_bytes):
    """Largest 128-multiple query tile (dividing HW) whose working set fits VMEM."""
    fixed = 2 * C * HW * 4 + 2 * C * HW * 2      # double-buffered x + bf16 K'/V cache
    per_row = 3 * HW * 4 + 16 * C                # score-path temps + q/out rows
    if HW % 128 != 0:
        # TODO(synk): KV-blocked online-softmax path for large non-128-multiple HW.
        if fixed + per_row * HW > budget_bytes:
            raise ValueError(
                f"HW={HW} is not a multiple of 128 and the full (HW,HW) score tile "
                f"does not fit the VMEM budget; an online-softmax path is required.")
        return HW
    max_rows = (budget_bytes - fixed) // per_row
    tq = max(128, min(HW, (max_rows // 128) * 128))
    while HW % tq:
        tq -= 128
    return int(tq)


def simple_frequency_attention(x, w_qkv, w_out, b_out):
    """PyTorch SimpleFrequencyAttention.forward (eval mode).

    x:     (B, C, H, W)  NCHW, like the PyTorch module
    w_qkv: (3C, C)       Conv2d(C, 3C, 1, bias=False) weight (squeezed)
    w_out: (C, C)        Conv2d(C, C, 1) weight (squeezed)
    b_out: (C,)          Conv2d(C, C, 1) bias
    returns (B, C, H, W) in x.dtype
    """
    B, C, H, W = x.shape
    HW = H * W
    scale = float(C) ** -0.5
    hp = lax.Precision.HIGHEST

    # Host-side (exact f32) weight folding:
    #   scores = (Wq x)^T (Wk x) * scale = x^T [ (scale*Wq)^T Wk ] x
    wq, wk, wv = jnp.split(w_qkv.astype(jnp.float32), 3, axis=0)
    m_qk = jnp.dot((wq * scale).T, wk, precision=hp)                       # (C, C)
    w_packed = jnp.stack([m_qk, wv, w_out.astype(jnp.float32)], axis=0)    # (3, C, C)
    bo = b_out.astype(jnp.float32).reshape(C, 1)

    x_in = x.reshape(B, C, HW)               # channel-major, HW lane-dense; native dtype

    vmem_cap = _vmem_capacity_bytes()
    TQ = _pick_tq(HW, C, int(vmem_cap * 0.7))
    grid = (B, HW // TQ)

    out = pl.pallas_call(
        _attn_fused_kernel,
        out_shape=jax.ShapeDtypeStruct((B, C, HW), x.dtype),
        grid=grid,
        in_specs=[
            pl.BlockSpec((None, C, HW), lambda b, qi: (b, 0, 0)),   # x (resident over qi)
            pl.BlockSpec((3, C, C), lambda b, qi: (0, 0, 0)),       # packed weights
            pl.BlockSpec((C, 1), lambda b, qi: (0, 0)),             # bias
        ],
        out_specs=pl.BlockSpec((None, C, TQ), lambda b, qi: (b, 0, qi)),
        scratch_shapes=[
            pltpu.VMEM((C, HW), jnp.bfloat16),                      # K' cache
            pltpu.VMEM((C, HW), jnp.bfloat16),                      # V  cache
        ],
        compiler_params=pltpu.CompilerParams(
            # b parallel (megacore); qi arbitrary (K'/V scratch carried across it).
            dimension_semantics=("parallel", "arbitrary"),
            vmem_limit_bytes=int(min(vmem_cap * 0.85, 100 * 2**20)),
        ),
    )(x_in, w_packed, bo)
    return out.reshape(B, C, H, W)


# ----------------------------------------------------------------------------
# Pure-JAX reference mirroring the PyTorch forward (dropout in eval mode)
# ----------------------------------------------------------------------------
def attention_ref(x, w_qkv, w_out, b_out):
    B, C, H, W = x.shape
    scale = float(C) ** -0.5
    hp = lax.Precision.HIGHEST
    xf = x.reshape(B, C, H * W).astype(jnp.float32)
    qkv = jnp.einsum('oc,bcp->bop', w_qkv.astype(jnp.float32), xf, precision=hp)
    q, k, v = jnp.split(qkv, 3, axis=1)                              # chunk(3, dim=1)
    attn = jnp.einsum('bcp,bck->bpk', q, k, precision=hp) * scale    # bmm(q^T, k)
    attn = jax.nn.softmax(attn, axis=-1)
    out = jnp.einsum('bpk,bck->bcp', attn, v, precision=hp)          # bmm(attn, v^T)^T
    out = (jnp.einsum('oc,bcp->bop', w_out.astype(jnp.float32), out, precision=hp)
           + b_out.astype(jnp.float32)[None, :, None])
    return out.reshape(B, C, H, W)                                   # dropout: identity


# ----------------------------------------------------------------------------
if __name__ == "__main__":
    key = jax.random.PRNGKey(0)
    kx, k1, k2, k3 = jax.random.split(key, 4)

    B, C, H, W = 2, 4, 16, 16                      # small shapes; HW = 256
    x = jax.random.normal(kx, (B, C, H, W), jnp.float32)
    w_qkv = jax.random.normal(k1, (3 * C, C), jnp.float32) * (C ** -0.5)
    w_out = jax.random.normal(k2, (C, C), jnp.float32) * (C ** -0.5)
    b_out = jax.random.normal(k3, (C,), jnp.float32) * 0.1

    fwd = jax.jit(simple_frequency_attention)
    out = fwd(x, w_qkv, w_out, b_out)
    jax.block_until_ready(out)

    ref = attention_ref(x, w_qkv, w_out, b_out)
    assert out.shape == (B, C, H, W), out.shape
    assert bool(jnp.all(jnp.isfinite(out)))
    # bf16 MXU operands + approx reciprocal (per perf feedback) give ~1e-2-level
    # deviations vs. the f32 reference; 1e-1 max-abs keeps a comfortable margin.
    max_err = float(jnp.max(jnp.abs(out - ref)))
    mean_err = float(jnp.mean(jnp.abs(out - ref)))
    assert max_err < 1e-1, f"max |pallas - ref| = {max_err}"
    assert mean_err < 2e-2, f"mean |pallas - ref| = {mean_err}"
    print("KERNEL_OK")
</pallas_src>

<mosaic_0001>
module attributes {stable_mosaic.version = 11 : i64} {
  func.func @_attn_fused_kernel(%arg0: i32, %arg1: i32, %arg2: memref<1x4x256xf32, #tpu.memory_space<vmem>>, %arg3: memref<3x4x4xf32, #tpu.memory_space<vmem>>, %arg4: memref<4x1xf32, #tpu.memory_space<vmem>>, %arg5: memref<1x4x256xf32, #tpu.memory_space<vmem>>, %arg6: memref<4x256xbf16, #tpu.memory_space<vmem>>, %arg7: memref<4x256xbf16, #tpu.memory_space<vmem>>) attributes {dimension_semantics = [#tpu.dimension_semantics<parallel>, #tpu.dimension_semantics<arbitrary>], iteration_bounds = array<i64: 2, 1>, scalar_prefetch = 0 : i64, scratch_operands = 2 : i64, tpu.core_type = #tpu.core_type<tc>, window_params = [{transform_indices = @transform_0, window_bounds = array<i64: 1, 4, 256>}, {pipeline_mode = #tpu.pipeline_mode<synchronous>, transform_indices = @transform_1, window_bounds = array<i64: 3, 4, 4>}, {pipeline_mode = #tpu.pipeline_mode<synchronous>, transform_indices = @transform_2, window_bounds = array<i64: 4, 1>}, {transform_indices = @transform_3, window_bounds = array<i64: 1, 4, 256>}]} {
    %c0_i32 = arith.constant 0 : i32
    %0 = arith.cmpi eq, %arg1, %c0_i32 : i32
    %1 = arith.extui %0 : i1 to i32
    %c0_i32_0 = arith.constant 0 : i32
    %2 = arith.cmpi ne, %1, %c0_i32_0 : i32
    scf.if %2 {
      %c0_17 = arith.constant 0 : index
      %c0_18 = arith.constant 0 : index
      %c0_19 = arith.constant 0 : index
      %34 = vector.load %arg2[%c0_17, %c0_18, %c0_19] : memref<1x4x256xf32, #tpu.memory_space<vmem>>, vector<1x4x256xf32>
      %35 = vector.shape_cast %34 : vector<1x4x256xf32> to vector<4x256xf32>
      %c0_20 = arith.constant 0 : index
      %c0_21 = arith.constant 0 : index
      %c0_22 = arith.constant 0 : index
      %36 = vector.load %arg3[%c0_20, %c0_21, %c0_22] : memref<3x4x4xf32, #tpu.memory_space<vmem>>, vector<1x4x4xf32>
      %37 = vector.shape_cast %36 : vector<1x4x4xf32> to vector<4x4xf32>
      %cst_23 = arith.constant dense<0.000000e+00> : vector<4x256xf32>
      %38 = tpu.matmul %37, %35, %cst_23 {dimension_numbers = #tpu.dot_dimension_numbers<[1], [0], [0], [1], [0, 0, 1, 1], [], []>} : vector<4x4xf32>, vector<4x256xf32>, vector<4x256xf32> -> vector<4x256xf32>
      %39 = arith.truncf %38 : vector<4x256xf32> to vector<4x256xbf16>
      %c0_24 = arith.constant 0 : index
      %c0_25 = arith.constant 0 : index
      %40 = vector.load %arg6[%c0_24, %c0_25] : memref<4x256xbf16, #tpu.memory_space<vmem>>, vector<4x256xbf16>
      tpu.vector_store %arg6[%c0_24, %c0_25], %39 {strides = array<i32>} : memref<4x256xbf16, #tpu.memory_space<vmem>>, vector<4x256xbf16>,
      %c1 = arith.constant 1 : index
      %c0_26 = arith.constant 0 : index
      %c0_27 = arith.constant 0 : index
      %41 = vector.load %arg3[%c1, %c0_26, %c0_27] : memref<3x4x4xf32, #tpu.memory_space<vmem>>, vector<1x4x4xf32>
      %42 = vector.shape_cast %41 : vector<1x4x4xf32> to vector<4x4xf32>
      %cst_28 = arith.constant dense<0.000000e+00> : vector<4x256xf32>
      %43 = tpu.matmul %42, %35, %cst_28 {dimension_numbers = #tpu.dot_dimension_numbers<[1], [0], [0], [1], [0, 0, 1, 1], [], []>} : vector<4x4xf32>, vector<4x256xf32>, vector<4x256xf32> -> vector<4x256xf32>
      %44 = arith.truncf %43 : vector<4x256xf32> to vector<4x256xbf16>
      %c0_29 = arith.constant 0 : index
      %c0_30 = arith.constant 0 : index
      %45 = vector.load %arg7[%c0_29, %c0_30] : memref<4x256xbf16, #tpu.memory_space<vmem>>, vector<4x256xbf16>
      tpu.vector_store %arg7[%c0_29, %c0_30], %44 {strides = array<i32>} : memref<4x256xbf16, #tpu.memory_space<vmem>>, vector<4x256xbf16>,
    } else {
    }
    %c256_i32 = arith.constant 256 : i32
    %3 = arith.muli %arg1, %c256_i32 : i32
    %4 = tpu.assume_multiple %3, 128 : i32
    %c0 = arith.constant 0 : index
    %c0_1 = arith.constant 0 : index
    %5 = arith.index_cast %4 : i32 to index
    %6 = vector.load %arg2[%c0, %c0_1, %5] : memref<1x4x256xf32, #tpu.memory_space<vmem>>, vector<1x4x256xf32>
    %7 = vector.shape_cast %6 : vector<1x4x256xf32> to vector<4x256xf32>
    %8 = tpu.transpose %7, [1, 0] : vector<4x256xf32> -> vector<256x4xf32>
    %9 = arith.truncf %8 : vector<256x4xf32> to vector<256x4xbf16>
    %c0_2 = arith.constant 0 : index
    %c0_3 = arith.constant 0 : index
    %10 = vector.load %arg6[%c0_2, %c0_3] : memref<4x256xbf16, #tpu.memory_space<vmem>>, vector<4x256xbf16>
    %cst = arith.constant dense<0.000000e+00> : vector<256x256xf32>
    %11 = tpu.matmul %9, %10, %cst {dimension_numbers = #tpu.dot_dimension_numbers<[1], [0], [0], [1], [0, 0, 1, 1], [], []>} : vector<256x4xbf16>, vector<4x256xbf16>, vector<256x256xf32> -> vector<256x256xf32>
    %cst_4 = arith.constant dense<0xFF800000> : vector<256xf32>
    %12 = vector.multi_reduction <maximumf>, %11, %cst_4 [1] : vector<256x256xf32> to vector<256xf32>
    %13 = vector.shape_cast %12 : vector<256xf32> to vector<256x1xf32>
    %14 = vector.broadcast %13 : vector<256x1xf32> to vector<256x256xf32>
    %15 = arith.subf %11, %14 : vector<256x256xf32>
    %16 = math.exp %15 : vector<256x256xf32>
    %cst_5 = arith.constant dense<0.000000e+00> : vector<256xf32>
    %17 = vector.multi_reduction <add>, %16, %cst_5 [1] : vector<256x256xf32> to vector<256xf32>
    %18 = vector.shape_cast %17 : vector<256xf32> to vector<256x1xf32>
    %19 = tpu.reciprocal %18 {approx = true} : vector<256x1xf32> -> vector<256x1xf32>
    %20 = vector.broadcast %19 : vector<256x1xf32> to vector<256x256xf32>
    %21 = arith.mulf %16, %20 : vector<256x256xf32>
    %22 = arith.truncf %21 : vector<256x256xf32> to vector<256x256xbf16>
    %c0_6 = arith.constant 0 : index
    %c0_7 = arith.constant 0 : index
    %23 = vector.load %arg7[%c0_6, %c0_7] : memref<4x256xbf16, #tpu.memory_space<vmem>>, vector<4x256xbf16>
    %cst_8 = arith.constant dense<0.000000e+00> : vector<4x256xf32>
    %24 = tpu.matmul %23, %22, %cst_8 {dimension_numbers = #tpu.dot_dimension_numbers<[1], [1], [0], [0], [0, 0, 1, 0], [], []>} : vector<4x256xbf16>, vector<256x256xbf16>, vector<4x256xf32> -> vector<4x256xf32>
    %c2 = arith.constant 2 : index
    %c0_9 = arith.constant 0 : index
    %c0_10 = arith.constant 0 : index
    %25 = vector.load %arg3[%c2, %c0_9, %c0_10] : memref<3x4x4xf32, #tpu.memory_space<vmem>>, vector<1x4x4xf32>
    %26 = vector.shape_cast %25 : vector<1x4x4xf32> to vector<4x4xf32>
    %cst_11 = arith.constant dense<0.000000e+00> : vector<4x256xf32>
    %27 = tpu.matmul %26, %24, %cst_11 {dimension_numbers = #tpu.dot_dimension_numbers<[1], [0], [0], [1], [0, 0, 1, 1], [], []>} : vector<4x4xf32>, vector<4x256xf32>, vector<4x256xf32> -> vector<4x256xf32>
    %c0_12 = arith.constant 0 : index
    %c0_13 = arith.constant 0 : index
    %28 = vector.load %arg4[%c0_12, %c0_13] : memref<4x1xf32, #tpu.memory_space<vmem>>, vector<4x1xf32>
    %29 = vector.broadcast %28 : vector<4x1xf32> to vector<4x256xf32>
    %30 = arith.addf %27, %29 : vector<4x256xf32>
    %c0_14 = arith.constant 0 : index
    %c0_15 = arith.constant 0 : index
    %c0_16 = arith.constant 0 : index
    %31 = vector.load %arg5[%c0_14, %c0_15, %c0_16] : memref<1x4x256xf32, #tpu.memory_space<vmem>>, vector<1x4x256xf32>
    %32 = vector.shape_cast %31 : vector<1x4x256xf32> to vector<4x256xf32>
    %33 = vector.shape_cast %30 : vector<4x256xf32> to vector<1x4x256xf32>
    tpu.vector_store %arg5[%c0_14, %c0_15, %c0_16], %33 {strides = array<i32>} : memref<1x4x256xf32, #tpu.memory_space<vmem>>, vector<1x4x256xf32>,
    return
  }
  func.func @transform_0(%arg0: i32, %arg1: i32) -> (i32, i32, i32) {
    %c0_i32 = arith.constant 0 : i32
    %c0_i32_0 = arith.constant 0 : i32
    %c0_i32_1 = arith.constant 0 : i32
    return %arg0, %c0_i32, %c0_i32_0 : i32, i32, i32
  }
  func.func @transform_1(%arg0: i32, %arg1: i32) -> (i32, i32, i32) {
    %c0_i32 = arith.constant 0 : i32
    %c0_i32_0 = arith.constant 0 : i32
    %c0_i32_1 = arith.constant 0 : i32
    %c0_i32_2 = arith.constant 0 : i32
    return %c0_i32, %c0_i32_0, %c0_i32_1 : i32, i32, i32
  }
  func.func @transform_2(%arg0: i32, %arg1: i32) -> (i32, i32) {
    %c0_i32 = arith.constant 0 : i32
    %c0_i32_0 = arith.constant 0 : i32
    %c0_i32_1 = arith.constant 0 : i32
    return %c0_i32, %c0_i32_0 : i32, i32
  }
  func.func @transform_3(%arg0: i32, %arg1: i32) -> (i32, i32, i32) {
    %c0_i32 = arith.constant 0 : i32
    %c0_i32_0 = arith.constant 0 : i32
    return %arg0, %c0_i32, %arg1 : i32, i32, i32
  }
}

</mosaic_0001>

<bundles_post_ra>
// kernel: split.5
= control target key start
LH: loop header
LB: loop body
LE: loop exit
PB: predicated region body
PF: predicated region fallthrough
CT: control target
= control target key end

     0   :  { %v3_v0 = vlaneseq  ;;  %s28_s0 = inlined_call_operand.vmem [shape: f32[12,4], index: 0, kind: input, shape index: {}]   ;;  %s29_s1 = inlined_call_operand.vmem [shape: f32[4,4], index: 1, kind: output, shape index: {}]  }
   0x1   :  { %v2_v1 = vld [vmem:[%s28_s0] sm:$0xf]  ;;  %s11_s0 = smov 120  }
   0x2   :  { %v4_v2 = vand.u32 127, %v3_v0 }
   0x4   :  { %vm5_vm0 = vcmp.lt.s32.totalorder %v4_v2, 8 }
   0x5   :  { %v6_v3 = vsel %vm5_vm0, 0, %v2_v1 }
   0x6   :  { %7 = vrot.lane.b32.xlu0 %v6_v3, %s11_s0 }
  0x78   :  { %v8_v4 = vpop.permute.xlu0 %7 }
  0x79   :  { %9 = vst [vmem:[%s29_s1] sm:$0xf] %v8_v4 }

// kernel: simple_frequency_attention.1
= control target key start
LH: loop header
LB: loop body
LE: loop exit
PB: predicated region body
PF: predicated region fallthrough
CT: control target
= control target key end

     0   :  { %s1790_s12 = smov 0   ;;  %s1792_s13 = smov 0   ;;  %s2432_s0 = inlined_call_operand.vmem [shape: f32[2,4,256], index: 0, kind: input, shape index: {}]   ;;  %s2433_s1 = inlined_call_operand.vmem [shape: f32[3,4,4], index: 1, kind: input, shape index: {}]   ;;  %s2434_s2 = inlined_call_operand.vmem [shape: f32[4,1], index: 2, kind: input, shape index: {}]   ;;  %s2435_s3 = inlined_call_operand.vmem [shape: f32[2,4,256], index: 3, kind: output, shape index: {}]  }
   0x1   :  { %s1794_s14 = smov 0  }
   0x2 LB: > { %s25_s15 = sadd.s32 1, %s1762_s13  ;;  %p1481_p0 = scmp.ge.s32.totalorder %s1766_s14, 1  ;;  %s1766_s14 = sphi %s1794_s14, %s13_s14   ;;  %s1762_s13 = sphi %s1792_s13, %s2536_s13   ;;  %s1758_s12 = sphi %s1790_s12, %s2535_s12  }
   0x3   : > { %p27_p1 = scmp.ge.s32.totalorder %s25_s15, 2  ;;  %p151_p2 = scmp.lt.s32.totalorder %s1766_s14, 3 }
   0x5   : > { %s2538_s15 = smov (%p27_p1, %s25_s15), 0  ;;  %p152_p3 = pnand %p1481_p0, %p151_p2 }
   0x7   : > { %155 = sbr.rel (%p152_p3) target bundleno = 1393 (0x571), region = 32 }
   0xc   : > { %p179_p4 = scmp.lt.s32.totalorder %s1758_s12, 1  ;;  %v1768_v0 = vmov 0.0   ;;  %vm207_vm0 = vcmask 1043456   ;;  %v200_v3 = vld [vmem:[%s2433_s1] sm:$0xf]  ;;  %vm203_vm1 = vcmask 31744  }
   0xd   : > { %276 = vmatprep.mubr.f32.mxu0 %v1768_v0  ;;  %366 = vmatprep.mubr.f32.mxu1 %v1768_v0  ;;  %v1769_v4 = vmov 0   ;;  %vm535_vm2 = vcmask 1041408  }
   0xe   : > { %s2540_s12 = smov (!%p179_p4, %s1758_s12), 1 }
   0xf   : > { %s1522_s16 = sshll.u32 %s2540_s12, 3 }
  0x10   : > { %s183_s19 = scalar_lea.vmem %s2432_s0, %s1522_s16  ;;  %s192_s30 = scalar_lea.vmem %s2435_s3, %s1522_s16 }
  0x11   : > { %v199_v1 = vld [vmem:[%s183_s19] sm:$0xff] }
  0x12   : > { %v202_v2 = vcombine.high %v199_v1, %v199_v1  ;;  %396 = vxpose.xlu0.b32.start.end [1/1] (short) %v199_v1, 128 }
  0x14   : > { %1486 = vmatprep.subr.msk.mxu0 %vm207_vm0, %v202_v2  ;;  %1492 = vmatprep.subr.msk.mxu1 %vm207_vm0, %v202_v2 }
  0x15   : > { %1487 = vmatpush1.msk.msra.mxu0 %vm207_vm0, %v199_v1  ;;  %1493 = vmatpush1.msk.msra.mxu1 %vm207_vm0, %v199_v1 }
  0x16   : > { %1488 = vmatmul.mubr.msk.f32.vlgmr.msra.gmra.mxu0 %vm203_vm1, %v200_v3 }
  0x17   : > { %574 = vmatprep.mubr.bf16.mxu0 %v1769_v4 }
  0x4f   : > { %428 = vxpose.xlu0.b32.start.end [1/1] (short) %v202_v2, 128 }
  0x78   : > { %1550 = vset.pattern.permute.xlu0 %v1769_v4 }
  0x8e   : > { %v412_v5 = vpop.trf.xlu0 }
  0x92   : > { %v413_v6 = vpop.trf.xlu0 }
  0x93   : > { %v460_v23 = vpack.c.bf16 %v413_v6, %v412_v5 }
  0x96   : > { %v414_v7 = vpop.trf.xlu0 }
  0x9a   : > { %v415_v8 = vpop.trf.xlu0 }
  0x9b   : > { %v461_v25 = vpack.c.bf16 %v415_v8, %v414_v7 }
  0x9e   : > { %v416_v9 = vpop.trf.xlu0 }
  0xa2   : > { %v417_v10 = vpop.trf.xlu0 }
  0xa3   : > { %v462_v28 = vpack.c.bf16 %v417_v10, %v416_v9 }
  0xa6   : > { %v418_v11 = vpop.trf.xlu0 }
  0xaa   : > { %v419_v12 = vpop.trf.xlu0 }
  0xab   : > { %v463_v30 = vpack.c.bf16 %v419_v12, %v418_v11 }
  0xae   : > { %v420_v13 = vpop.trf.xlu0 }
  0xb2   : > { %v421_v16 = vpop.trf.xlu0 }
  0xb3   : > { %v464_v33 = vpack.c.bf16 %v421_v16, %v420_v13 }
  0xb6   : > { %v422_v18 = vpop.trf.xlu0 }
  0xba   : > { %v423_v21 = vpop.trf.xlu0 }
  0xbb   : > { %v465_v35 = vpack.c.bf16 %v423_v21, %v422_v18 }
  0xbe   : > { %v424_v24 = vpop.trf.xlu0 }
  0xc2   : > { %v425_v26 = vpop.trf.xlu0 }
  0xc3   : > { %v466_v37 = vpack.c.bf16 %v425_v26, %v424_v24 }
  0xc6   : > { %v426_v27 = vpop.trf.xlu0 }
  0xca   : > { %v427_v29 = vpop.trf.xlu0 }
  0xcb   : > { %v467_v40 = vpack.c.bf16 %v427_v29, %v426_v27 }
  0xce   : > { %v444_v31 = vpop.trf.xlu0 }
  0xd2   : > { %v445_v32 = vpop.trf.xlu0 }
  0xd3   : > { %v468_v42 = vpack.c.bf16 %v445_v32, %v444_v31 }
  0xd6   : > { %v278_v14 = vpop.f32.mrf.mxu0  ;;  %v446_v34 = vpop.trf.xlu0 }
  0xd8   : > { %v280_v15 = vpop.f32.mrf.mxu0 }
  0xd9   : > { %v1489_v17 = vpack.c.bf16 %v280_v15, %v278_v14 }
  0xda   : > { %v447_v36 = vpop.trf.xlu0 }
  0xdb   : > { %1490 = vst.sshfl [vmem:[#allocation2] sm:$0x33 pattern:$0x76325410] %v1489_v17  ;;  %v469_v44 = vpack.c.bf16 %v447_v36, %v446_v34 }
  0xde   : > { %v448_v38 = vpop.trf.xlu0 }
  0xe2   : > { %v1497_v19 = vld.sshfl [vmem:[#allocation2] sm:$0x33 pattern:$0x76325410]  ;;  %v449_v39 = vpop.trf.xlu0 }
  0xe3   : > { %v485_v20 = vcombine.high %v1497_v19, %v1497_v19  ;;  %v537_v22 = vsel %vm535_vm2, %v1497_v19, 0  ;;  %v470_v46 = vpack.c.bf16 %v449_v39, %v448_v38 }
  0xe5   : > { %1498 = vmatprep.subr.msk.bf16.mxu0 %vm535_vm2, %v485_v20 }
  0xe6   : > { %557 = vmatpush1.bf16.msra.mxu0 %v537_v22  ;;  %v450_v41 = vpop.trf.xlu0 }
  0xe9   : > { %1499 = vmatmul.mubr.msk.bf16.vlgmr.msra.gmra.mxu0 %vm203_vm1, %v460_v23 }
  0xea   : > { %584 = vmatprep.mubr.bf16.mxu0 %v1769_v4  ;;  %v451_v43 = vpop.trf.xlu0 }
  0xeb   : > { %v471_v49 = vpack.c.bf16 %v451_v43, %v450_v41 }
  0xee   : > { %v452_v45 = vpop.trf.xlu0 }
  0xf1   : > { %1500 = vmatmul.mubr.msk.bf16.gmra.mxu0 %vm203_vm1, %v461_v25 }
  0xf2   : > { %594 = vmatprep.mubr.bf16.mxu0 %v1769_v4  ;;  %v453_v47 = vpop.trf.xlu0 }
  0xf3   : > { %v472_v51 = vpack.c.bf16 %v453_v47, %v452_v45 }
  0xf6   : > { %v454_v48 = vpop.trf.xlu0 }
  0xf9   : > { %1501 = vmatmul.mubr.msk.bf16.gmra.mxu0 %vm203_vm1, %v462_v28 }
  0xfa   : > { %604 = vmatprep.mubr.bf16.mxu0 %v1769_v4  ;;  %v455_v50 = vpop.trf.xlu0 }
  0xfb   : > { %v473_v53 = vpack.c.bf16 %v455_v50, %v454_v48 }
  0xfe   : > { %v456_v52 = vpop.trf.xlu0 }
 0x101   : > { %1502 = vmatmul.mubr.msk.bf16.gmra.mxu0 %vm203_vm1, %v463_v30 }
 0x102   : > { %614 = vmatprep.mubr.bf16.mxu0 %v1769_v4  ;;  %v457_v54 = vpop.trf.xlu0 }
 0x103   : > { %v474_v56 = vpack.c.bf16 %v457_v54, %v456_v52 }
 0x106   : > { %v458_v55 = vpop.trf.xlu0 }
 0x109   : > { %1503 = vmatmul.mubr.msk.bf16.gmra.mxu0 %vm203_vm1, %v464_v33 }
 0x10a   : > { %624 = vmatprep.mubr.bf16.mxu0 %v1769_v4  ;;  %v459_v57 = vpop.trf.xlu0 }
 0x10b   : > { %v475_v58 = vpack.c.bf16 %v459_v57, %v458_v55 }
 0x111   : > { %1504 = vmatmul.mubr.msk.bf16.gmra.mxu0 %vm203_vm1, %v465_v35 }
 0x112   : > { %634 = vmatprep.mubr.bf16.mxu0 %v1769_v4 }
 0x119   : > { %1505 = vmatmul.mubr.msk.bf16.gmra.mxu0 %vm203_vm1, %v466_v37 }
 0x11a   : > { %644 = vmatprep.mubr.bf16.mxu0 %v1769_v4 }
 0x121   : > { %1506 = vmatmul.mubr.msk.bf16.gmra.mxu0 %vm203_vm1, %v467_v40 }
 0x122   : > { %654 = vmatprep.mubr.bf16.mxu0 %v1769_v4 }
 0x129   : > { %1507 = vmatmul.mubr.msk.bf16.gmra.mxu0 %vm203_vm1, %v468_v42 }
 0x12a   : > { %664 = vmatprep.mubr.bf16.mxu0 %v1769_v4 }
 0x131   : > { %1508 = vmatmul.mubr.msk.bf16.gmra.mxu0 %vm203_vm1, %v469_v44 }
 0x132   : > { %674 = vmatprep.mubr.bf16.mxu0 %v1769_v4 }
 0x139   : > { %1509 = vmatmul.mubr.msk.bf16.gmra.mxu0 %vm203_vm1, %v470_v46 }
 0x13a   : > { %684 = vmatprep.mubr.bf16.mxu0 %v1769_v4 }
 0x141   : > { %1510 = vmatmul.mubr.msk.bf16.gmra.mxu0 %vm203_vm1, %v471_v49 }
 0x142   : > { %694 = vmatprep.mubr.bf16.mxu0 %v1769_v4 }
 0x149   : > { %1511 = vmatmul.mubr.msk.bf16.gmra.mxu0 %vm203_vm1, %v472_v51 }
 0x14a   : > { %704 = vmatprep.mubr.bf16.mxu0 %v1769_v4 }
 0x151   : > { %1512 = vmatmul.mubr.msk.bf16.gmra.mxu0 %vm203_vm1, %v473_v53 }
 0x152   : > { %714 = vmatprep.mubr.bf16.mxu0 %v1769_v4 }
 0x159   : > { %1513 = vmatmul.mubr.msk.bf16.gmra.mxu0 %vm203_vm1, %v474_v56 }
 0x15a   : > { %724 = vmatprep.mubr.bf16.mxu0 %v1769_v4 }
 0x161   : > { %1514 = vmatmul.mubr.msk.bf16.gmra.mxu0 %vm203_vm1, %v475_v58 }
 0x162   : > { %1382 = vmatprep.mubr.f32.mxu0 %v1768_v0 }
 0x1a9   : > { %v1860_v59 = vpop.f32.mrf.mxu0 }
 0x1ab   : > { %v1862_v60 = vpop.f32.mrf.mxu0 }
 0x1ac   : > { %v735_v51 = vmax.f32 %v1860_v59, %v1862_v60 }
 0x1ad   : > { %v1864_v61 = vpop.f32.mrf.mxu0 }
 0x1ae   : > { %2469 = vst [vmem:[#allocation4_spill] sm:$0xff] %v1864_v61 }
 0x1af   : > { %v1866_v62 = vpop.f32.mrf.mxu0 }
 0x1b0   : > { %2470 = vst [vmem:[#allocation5_spill] sm:$0xff] %v1866_v62  ;;  %v738_v54 = vmax.f32 %v1864_v61, %v1866_v62 }
 0x1b1   : > { %v1868_v63 = vpop.f32.mrf.mxu0 }
 0x1b3   : > { %v1870_v1 = vpop.f32.mrf.mxu0 }
 0x1b4   : > { %v741_v45 = vmax.f32 %v1868_v63, %v1870_v1 }
 0x1b5   : > { %v1872_v2 = vpop.f32.mrf.mxu0 }
 0x1b7   : > { %v1874_v3 = vpop.f32.mrf.mxu0 }
 0x1b8   : > { %v744_v48 = vmax.f32 %v1872_v2, %v1874_v3 }
 0x1b9   : > { %v1876_v4 = vpop.f32.mrf.mxu0 }
 0x1bb   : > { %v1878_v5 = vpop.f32.mrf.mxu0 }
 0x1bc   : > { %v747_v39 = vmax.f32 %v1876_v4, %v1878_v5 }
 0x1bd   : > { %v1880_v0 = vpop.f32.mrf.mxu0 }
 0x1bf   : > { %v1882_v6 = vpop.f32.mrf.mxu0 }
 0x1c0   : > { %v750_v42 = vmax.f32 %v1880_v0, %v1882_v6 }
 0x1c1   : > { %v1884_v7 = vpop.f32.mrf.mxu0 }
 0x1c3   : > { %v1886_v8 = vpop.f32.mrf.mxu0 }
 0x1c4   : > { %v753_v9 = vmax.f32 %v1884_v7, %v1886_v8 }
 0x1c5   : > { %v1890_v10 = vpop.f32.mrf.mxu0 }
 0x1c6   : > { %754 = vmax.xlane.f32.xlu1 %v753_v9 }
 0x1c7   : > { %v1892_v11 = vpop.f32.mrf.mxu0 }
 0x1c8   : > { %v756_v12 = vmax.f32 %v1890_v10, %v1892_v11 }
 0x1c9   : > { %v1896_v13 = vpop.f32.mrf.mxu0 }
 0x1ca   : > { %757 = vmax.xlane.f32.xlu1 %v756_v12 }
 0x1cb   : > { %v1898_v14 = vpop.f32.mrf.mxu0 }
 0x1cc   : > { %v759_v15 = vmax.f32 %v1896_v13, %v1898_v14 }
 0x1cd   : > { %v1902_v16 = vpop.f32.mrf.mxu0 }
 0x1ce   : > { %760 = vmax.xlane.f32.xlu1 %v759_v15 }
 0x1cf   : > { %v1904_v17 = vpop.f32.mrf.mxu0 }
 0x1d0   : > { %v762_v18 = vmax.f32 %v1902_v16, %v1904_v17 }
 0x1d1   : > { %v1908_v19 = vpop.f32.mrf.mxu0 }
 0x1d2   : > { %763 = vmax.xlane.f32.xlu1 %v762_v18 }
 0x1d3   : > { %v1910_v20 = vpop.f32.mrf.mxu0 }
 0x1d4   : > { %v765_v21 = vmax.f32 %v1908_v19, %v1910_v20 }
 0x1d5   : > { %v1914_v22 = vpop.f32.mrf.mxu0 }
 0x1d6   : > { %766 = vmax.xlane.f32.xlu1 %v765_v21 }
 0x1d7   : > { %v1916_v23 = vpop.f32.mrf.mxu0 }
 0x1d8   : > { %v768_v24 = vmax.f32 %v1914_v22, %v1916_v23 }
 0x1d9   : > { %v1920_v25 = vpop.f32.mrf.mxu0 }
 0x1da   : > { %769 = vmax.xlane.f32.xlu1 %v768_v24 }
 0x1db   : > { %v1922_v26 = vpop.f32.mrf.mxu0 }
 0x1dc   : > { %v771_v27 = vmax.f32 %v1920_v25, %v1922_v26 }
 0x1dd   : > { %v1926_v28 = vpop.f32.mrf.mxu0 }
 0x1de   : > { %772 = vmax.xlane.f32.xlu1 %v771_v27 }
 0x1df   : > { %v1928_v29 = vpop.f32.mrf.mxu0 }
 0x1e0   : > { %v774_v30 = vmax.f32 %v1926_v28, %v1928_v29 }
 0x1e1   : > { %v1932_v31 = vpop.f32.mrf.mxu0 }
 0x1e2   : > { %775 = vmax.xlane.f32.xlu1 %v774_v30 }
 0x1e3   : > { %v1934_v32 = vpop.f32.mrf.mxu0 }
 0x1e4   : > { %v777_v33 = vmax.f32 %v1932_v31, %v1934_v32 }
 0x1e5   : > { %v1938_v34 = vpop.f32.mrf.mxu0 }
 0x1e6   : > { %778 = vmax.xlane.f32.xlu1 %v777_v33 }
 0x1e7   : > { %v1940_v35 = vpop.f32.mrf.mxu0 }
 0x1e8   : > { %v780_v36 = vmax.f32 %v1938_v34, %v1940_v35 }
 0x1e9   : > { %v1944_v37 = vpop.f32.mrf.mxu0 }
 0x1ea   : > { %781 = vmax.xlane.f32.xlu1 %v780_v36 }
 0x1eb   : > { %v1946_v38 = vpop.f32.mrf.mxu0 }
 0x1ed   : > { %v1950_v40 = vpop.f32.mrf.mxu0 }
 0x1ee   : > { %2471 = vst [vmem:[#allocation6_spill] sm:$0xff] %v1950_v40  ;;  %748 = vmax.xlane.f32.xlu1 %v747_v39 }
 0x1ef   : > { %v1952_v41 = vpop.f32.mrf.mxu0 }
 0x1f0   : > { %2472 = vst [vmem:[#allocation7_spill] sm:$0xff] %v1952_v41 }
 0x1f1   : > { %v1956_v43 = vpop.f32.mrf.mxu0 }
 0x1f2   : > { %751 = vmax.xlane.f32.xlu1 %v750_v42 }
 0x1f3   : > { %v1958_v44 = vpop.f32.mrf.mxu0 }
 0x1f5   : > { %v1962_v46 = vpop.f32.mrf.mxu0 }
 0x1f6   : > { %742 = vmax.xlane.f32.xlu1 %v741_v45 }
 0x1f7   : > { %v1964_v47 = vpop.f32.mrf.mxu0 }
 0x1f9   : > { %v1968_v49 = vpop.f32.mrf.mxu0 }
 0x1fa   : > { %2473 = vst [vmem:[#allocation8_spill] sm:$0xff] %v1968_v49  ;;  %745 = vmax.xlane.f32.xlu1 %v744_v48 }
 0x1fb   : > { %v1970_v50 = vpop.f32.mrf.mxu0 }
 0x1fc   : > { %2474 = vst [vmem:[#allocation9_spill] sm:$0xff] %v1970_v50 }
 0x1fd   : > { %v1974_v52 = vpop.f32.mrf.mxu0 }
 0x1fe   : > { %2475 = vst [vmem:[#allocation10_spill] sm:$0xff] %v1974_v52  ;;  %736 = vmax.xlane.f32.xlu1 %v735_v51 }
 0x1ff   : > { %v1976_v53 = vpop.f32.mrf.mxu0 }
 0x200   : > { %2476 = vst [vmem:[#allocation11_spill] sm:$0xff] %v1976_v53 }
 0x201   : > { %v1980_v55 = vpop.f32.mrf.mxu0 }
 0x202   : > { %2477 = vst [vmem:[#allocation12_spill] sm:$0xff] %v1980_v55  ;;  %739 = vmax.xlane.f32.xlu1 %v738_v54 }
 0x203   : > { %v1982_v56 = vpop.f32.mrf.mxu0 }
 0x204   : > { %2478 = vst [vmem:[#allocation13_spill] sm:$0xff] %v1982_v56 }
 0x205   : > { %v1984_v57 = vpop.f32.mrf.mxu0 }
 0x206   : > { %2479 = vst [vmem:[#allocation14_spill] sm:$0xff] %v1984_v57 }
 0x207   : > { %v1986_v58 = vpop.f32.mrf.mxu0 }
 0x208   : > { %2480 = vst [vmem:[#allocation15_spill] sm:$0xff] %v1986_v58 }
 0x209   : > { %v1988_v9 = vpop.f32.mrf.mxu0 }
 0x20b   : > { %v1990_v12 = vpop.f32.mrf.mxu0 }
 0x20c   : > { %2481 = vst [vmem:[#allocation16_spill] sm:$0xff] %v1990_v12 }
 0x20d   : > { %v1992_v15 = vpop.f32.mrf.mxu0 }
 0x20e   : > { %2482 = vst [vmem:[#allocation17_spill] sm:$0xff] %v1992_v15 }
 0x20f   : > { %v1994_v18 = vpop.f32.mrf.mxu0 }
 0x210   : > { %2483 = vst [vmem:[#allocation18_spill] sm:$0xff] %v1994_v18 }
 0x211   : > { %v1996_v21 = vpop.f32.mrf.mxu0 }
 0x213   : > { %v1998_v24 = vpop.f32.mrf.mxu0 }
 0x215   : > { %v2000_v27 = vpop.f32.mrf.mxu0 }
 0x217   : > { %v2002_v30 = vpop.f32.mrf.mxu0 }
 0x219   : > { %v2004_v33 = vpop.f32.mrf.mxu0 }
 0x21b   : > { %v2006_v36 = vpop.f32.mrf.mxu0 }
 0x21c   : > { %2484 = vst [vmem:[#allocation19_spill] sm:$0xff] %v2006_v36  ;;  %v819_v40 = vmax.f32 %v2004_v33, %v2006_v36  ;;  %v807_v36 = vmax.f32 %v1988_v9, %v1990_v12 }
 0x21d   : > { %v2008_v39 = vpop.f32.mrf.mxu0 }
 0x21f   : > { %v2010_v42 = vpop.f32.mrf.mxu0 }
 0x220   : > { %v822_v61 = vmax.f32 %v2008_v39, %v2010_v42 }
 0x221   : > { %v2012_v45 = vpop.f32.mrf.mxu0 }
 0x223   : > { %v2014_v48 = vpop.f32.mrf.mxu0 }
 0x224   : > { %2485 = vst [vmem:[#allocation20_spill] sm:$0xff] %v2014_v48  ;;  %v825_v51 = vmax.f32 %v2012_v45, %v2014_v48  ;;  %v813_v48 = vmax.f32 %v1996_v21, %v1998_v24 }
 0x225   : > { %v2018_v54 = vpop.f32.mrf.mxu0 }
 0x226   : > { %826 = vmax.xlane.f32.xlu1 %v825_v51  ;;  %v816_v51 = vmax.f32 %v2000_v27, %v2002_v30 }
 0x227   : > { %v2022_v41 = vpop.f32.mrf.mxu0 }
 0x228   : > { %v828_v62 = vmax.f32 %v2018_v54, %v2022_v41 }
 0x22a   : > { %820 = vmax.xlane.f32.xlu1 %v819_v40  ;;  %829 = vmax.xlane.f32.xlu0 %v828_v62  ;;  %v810_v40 = vmax.f32 %v1992_v15, %v1994_v18  ;;  %v801_v62 = vmax.f32 %v1980_v55, %v1982_v56 }
 0x22e   : > { %823 = vmax.xlane.f32.xlu1 %v822_v61  ;;  %v804_v61 = vmax.f32 %v1984_v57, %v1986_v58 }
 0x232   : > { %814 = vmax.xlane.f32.xlu1 %v813_v48  ;;  %v795_v48 = vmax.f32 %v1968_v49, %v1970_v50 }
 0x236   : > { %817 = vmax.xlane.f32.xlu1 %v816_v51  ;;  %v798_v51 = vmax.f32 %v1974_v52, %v1976_v53 }
 0x23a   : > { %808 = vmax.xlane.f32.xlu1 %v807_v36 }
 0x23e   : > { %811 = vmax.xlane.f32.xlu1 %v810_v40 }
 0x242   : > { %802 = vmax.xlane.f32.xlu1 %v801_v62 }
 0x246   : > { %805 = vmax.xlane.f32.xlu1 %v804_v61 }
 0x24a   : > { %796 = vmax.xlane.f32.xlu1 %v795_v48 }
 0x24e   : > { %799 = vmax.xlane.f32.xlu1 %v798_v51 }
 0x24f   : > { %v2044_v36 = vpop.xlane.xlu1 %754 }
 0x253   : > { %v2046_v18 = vpop.xlane.xlu1 %757 }
 0x257   : > { %v2048_v40 = vpop.xlane.xlu1 %760 }
 0x25b   : > { %v2050_v56 = vpop.xlane.xlu1 %763 }
 0x25f   : > { %v767_v62 = vpop.xlane.xlu1 %766 }
 0x260   : > { %v851_v58 = vsub.f32 %v1908_v19, %v767_v62  ;;  %v852_v61 = vsub.f32 %v1910_v20, %v767_v62 }
 0x262   : > { %v935_v57 = vmul.f32 1.442695, %v851_v58  ;;  %v937_v50 = vmul.f32 1.442695, %v852_v61 }
 0x263   : > { %v770_v48 = vpop.xlane.xlu1 %769 }
 0x264   : > { %1552 = vpow2.f32 %v935_v57  ;;  %v853_v53 = vsub.f32 %v1914_v22, %v770_v48  ;;  %v854_v51 = vsub.f32 %v1916_v23, %v770_v48 }
 0x265   : > { %1554 = vpow2.f32 %v937_v50 }
 0x266   : > { %v939_v52 = vmul.f32 1.442695, %v853_v53  ;;  %v941_v49 = vmul.f32 1.442695, %v854_v51 }
 0x267   : > { %v773_v55 = vpop.xlane.xlu1 %772 }
 0x268   : > { %1556 = vpow2.f32 %v939_v52  ;;  %v855_v15 = vsub.f32 %v1920_v25, %v773_v55  ;;  %v856_v12 = vsub.f32 %v1922_v26, %v773_v55 }
 0x269   : > { %1558 = vpow2.f32 %v941_v49 }
 0x26a   : > { %v943_v19 = vmul.f32 1.442695, %v855_v15  ;;  %v945_v20 = vmul.f32 1.442695, %v856_v12 }
 0x26b   : > { %v776_v58 = vpop.xlane.xlu1 %775 }
 0x26c   : > { %1560 = vpow2.f32 %v943_v19  ;;  %v857_v57 = vsub.f32 %v1926_v28, %v776_v58  ;;  %v858_v22 = vsub.f32 %v1928_v29, %v776_v58  ;;  %v848_v58 = vsub.f32 %v1898_v14, %v2048_v40 }
 0x26d   : > { %1562 = vpow2.f32 %v945_v20 }
 0x26e   : > { %v947_v23 = vmul.f32 1.442695, %v857_v57  ;;  %v949_v50 = vmul.f32 1.442695, %v858_v22 }
 0x26f   : > { %v779_v53 = vpop.xlane.xlu1 %778 }
 0x270   : > { %1564 = vpow2.f32 %v947_v23  ;;  %v859_v52 = vsub.f32 %v1932_v31, %v779_v53  ;;  %v860_v25 = vsub.f32 %v1934_v32, %v779_v53 }
 0x271   : > { %v2062_v62 = vpop.eup %1552  ;;  %1566 = vpow2.f32 %v949_v50 }
 0x272   : > { %v2064_v26 = vpop.eup %1554  ;;  %v951_v49 = vmul.f32 1.442695, %v859_v52  ;;  %v953_v55 = vmul.f32 1.442695, %v860_v25  ;;  %v849_v52 = vsub.f32 %v1902_v16, %v2050_v56  ;;  %v929_v25 = vmul.f32 1.442695, %v848_v58 }
 0x273   : > { %v782_v12 = vpop.xlane.xlu1 %781  ;;  %v1053_v28 = vadd.f32 %v2064_v26, %v2062_v62 }
 0x274   : > { %1568 = vpow2.f32 %v951_v49  ;;  %v861_v29 = vsub.f32 %v1938_v34, %v782_v12  ;;  %v862_v15 = vsub.f32 %v1940_v35, %v782_v12  ;;  %v847_v35 = vsub.f32 %v1896_v13, %v2048_v40 }
 0x275   : > { %v2070_v61 = vpop.eup %1556  ;;  %1570 = vpow2.f32 %v953_v55  ;;  %1054 = vadd.xlane.f32.xlu1 %v1053_v28  ;;  %v850_v13 = vsub.f32 %v1904_v17, %v2050_v56 }
 0x276   : > { %v2072_v31 = vpop.eup %1558  ;;  %v955_v32 = vmul.f32 1.442695, %v861_v29  ;;  %v957_v48 = vmul.f32 1.442695, %v862_v15  ;;  %v927_v53 = vmul.f32 1.442695, %v847_v35 }
 0x277   : > { %v2074_v51 = vpop.xlane.xlu1 %748  ;;  %v1056_v19 = vadd.f32 %v2072_v31, %v2070_v61  ;;  %v931_v29 = vmul.f32 1.442695, %v849_v52 }
 0x278   : > { %1572 = vpow2.f32 %v955_v32  ;;  %v933_v32 = vmul.f32 1.442695, %v850_v13  ;;  %v789_v13 = vmax.f32 %v1956_v43, %v1958_v44 }
 0x279   : > { %v2078_v20 = vpop.eup %1560  ;;  %1574 = vpow2.f32 %v957_v48  ;;  %1057 = vadd.xlane.f32.xlu1 %v1056_v19 }
 0x27a   : > { %v2080_v34 = vpop.eup %1562  ;;  %1576 = vpow2.f32 %v927_v53  ;;  %v844_v53 = vsub.f32 %v1886_v8, %v2044_v36  ;;  %v792_v8 = vmax.f32 %v1962_v46, %v1964_v47 }
 0x27b   : > { %v2086_v57 = vpop.xlane.xlu1 %751  ;;  %v1059_v22 = vadd.f32 %v2080_v34, %v2078_v20  ;;  %1578 = vpow2.f32 %v929_v25 }
 0x27d   : > { %v2090_v23 = vpop.eup %1564  ;;  %1060 = vadd.xlane.f32.xlu1 %v1059_v22  ;;  %v843_v22 = vsub.f32 %v1884_v7, %v2044_v36  ;;  %v846_v7 = vsub.f32 %v1892_v11, %v2046_v18  ;;  %v1491_v36 = vld [vmem:[%s2433_s1 + $0x4] sm:$0xf]  ;;  %v839_v11 = vsub.f32 %v1876_v4, %v2074_v51  ;;  %v841_v4 = vsub.f32 %v1880_v0, %v2086_v57 }
 0x27e   : > { %v2092_v50 = vpop.eup %1566  ;;  %1494 = vmatmul.mubr.msk.f32.vlgmr.msra.gmra.mxu1 %vm203_vm1, %v1491_v36  ;;  %v783_v0 = vmax.f32 %v1944_v37, %v1946_v38  ;;  %v2489_v36 = vld [vmem:[#allocation5_spill] sm:$0xff] }
 0x27f   : > { %v743_v49 = vpop.xlane.xlu1 %742  ;;  %v1062_v14 = vadd.f32 %v2092_v50, %v2090_v23 }
 0x280   : > { %v835_v40 = vsub.f32 %v1868_v63, %v743_v49  ;;  %v836_v55 = vsub.f32 %v1870_v1, %v743_v49  ;;  %v919_v49 = vmul.f32 1.442695, %v843_v22 }
 0x281   : > { %v2102_v12 = vpop.eup %1568  ;;  %1063 = vadd.xlane.f32.xlu1 %v1062_v14  ;;  %v921_v14 = vmul.f32 1.442695, %v844_v53  ;;  %v915_v53 = vmul.f32 1.442695, %v841_v4 }
 0x282   : > { %v2104_v28 = vpop.eup %1570  ;;  %v903_v16 = vmul.f32 1.442695, %v835_v40  ;;  %v905_v15 = vmul.f32 1.442695, %v836_v55 }
 0x283   : > { %v2106_v17 = vpop.xlane.xlu1 %745  ;;  %v1065_v56 = vadd.f32 %v2104_v28, %v2102_v12 }
 0x284   : > { %1580 = vpow2.f32 %v903_v16  ;;  %v925_v16 = vmul.f32 1.442695, %v846_v7 }
 0x285   : > { %v2110_v63 = vpop.eup %1572  ;;  %1582 = vpow2.f32 %v905_v15  ;;  %1066 = vadd.xlane.f32.xlu1 %v1065_v56  ;;  %v840_v15 = vsub.f32 %v1878_v5, %v2074_v51  ;;  %v842_v5 = vsub.f32 %v1882_v6, %v2086_v57  ;;  %v838_v6 = vsub.f32 %v1874_v3, %v2106_v17  ;;  %v2491_v3 = vld [vmem:[#allocation6_spill] sm:$0xff] }
 0x286   : > { %v2112_v1 = vpop.eup %1574  ;;  %1584 = vpow2.f32 %v931_v29 }
 0x287   : > { %1586 = vpow2.f32 %v933_v32  ;;  %v737_v48 = vpop.xlane.xlu1 %736  ;;  %v1068_v19 = vadd.f32 %v2112_v1, %v2110_v63 }
 0x288   : > { %v831_v35 = vsub.f32 %v1860_v59, %v737_v48  ;;  %v832_v58 = vsub.f32 %v1862_v60, %v737_v48  ;;  %v845_v59 = vsub.f32 %v1890_v10, %v2046_v18  ;;  %v2126_v60 = vpop.eup %1576 }
 0x289   : > { %1069 = vadd.xlane.f32.xlu1 %v1068_v19  ;;  %v2135_v40 = vpop.eup %1578  ;;  %v911_v19 = vmul.f32 1.442695, %v839_v11  ;;  %v2490_v11 = vld [vmem:[#allocation7_spill] sm:$0xff] }
 0x28a   : > { %v895_v52 = vmul.f32 1.442695, %v831_v35  ;;  %v897_v25 = vmul.f32 1.442695, %v832_v58  ;;  %v923_v29 = vmul.f32 1.442695, %v845_v59  ;;  %v1047_v32 = vadd.f32 %v2135_v40, %v2126_v60 }
 0x28b   : > { %v913_v35 = vmul.f32 1.442695, %v840_v15  ;;  %v740_v57 = vpop.xlane.xlu1 %739  ;;  %v2488_v59 = vld [vmem:[#allocation4_spill] sm:$0xff] }
 0x28c   : > { %1588 = vpow2.f32 %v895_v52  ;;  %v837_v52 = vsub.f32 %v1872_v2, %v2106_v17  ;;  %v833_v2 = vsub.f32 %v2488_v59, %v740_v57  ;;  %v786_v17 = vmax.f32 %v2491_v3, %v2490_v11 }
 0x28d   : > { %1590 = vpow2.f32 %v897_v25  ;;  %790 = vmax.xlane.f32.xlu1 %v789_v13  ;;  %v917_v25 = vmul.f32 1.442695, %v842_v5 }
 0x28e   : > { %1592 = vpow2.f32 %v919_v49 }
 0x28f   : > { %1594 = vpow2.f32 %v921_v14  ;;  %v907_v14 = vmul.f32 1.442695, %v837_v52 }
 0x290   : > { %1596 = vpow2.f32 %v923_v29  ;;  %v834_v29 = vsub.f32 %v2489_v36, %v740_v57 }
 0x291   : > { %v2138_v55 = vpop.eup %1580  ;;  %793 = vmax.xlane.f32.xlu1 %v792_v8  ;;  %1598 = vpow2.f32 %v925_v16  ;;  %v909_v8 = vmul.f32 1.442695, %v838_v6  ;;  %v899_v16 = vmul.f32 1.442695, %v833_v2 }
 0x292   : > { %v2140_v10 = vpop.eup %1582  ;;  %1600 = vpow2.f32 %v911_v19 }
 0x293   : > { %v2144_v18 = vpop.eup %1584  ;;  %v1029_v56 = vadd.f32 %v2140_v10, %v2138_v55  ;;  %1602 = vpow2.f32 %v913_v35 }
 0x294   : > { %v2152_v48 = vpop.eup %1586  ;;  %1604 = vpow2.f32 %v915_v53 }
 0x295   : > { %1048 = vadd.xlane.f32.xlu1 %v1047_v32  ;;  %1030 = vadd.xlane.f32.xlu0 %v1029_v56  ;;  %v1050_v51 = vadd.f32 %v2152_v48, %v2144_v18  ;;  %1606 = vpow2.f32 %v917_v25  ;;  %v901_v32 = vmul.f32 1.442695, %v834_v29 }
 0x296   : > { %1608 = vpow2.f32 %v907_v14  ;;  %v2492_v14 = vld [vmem:[#allocation20_spill] sm:$0xff] }
 0x297   : > { %1610 = vpow2.f32 %v909_v8 }
 0x298   : > { %1612 = vpow2.f32 %v899_v16 }
 0x299   : > { %v2160_v58 = vpop.eup %1588  ;;  %1051 = vadd.xlane.f32.xlu1 %v1050_v51  ;;  %1614 = vpow2.f32 %v901_v32 }
 0x29a   : > { %2486 = vst [vmem:[#allocation21_spill] sm:$0xff] %v2160_v58  ;;  %v2162_v22 = vpop.eup %1590 }
 0x29b   : > { %2487 = vst [vmem:[#allocation22_spill] sm:$0xff] %v2162_v22  ;;  %v1023_v13 = vadd.f32 %v2162_v22, %v2160_v58  ;;  %v2172_v49 = vpop.eup %1592 }
 0x29c   : > { %v2175_v7 = vpop.eup %1594 }
 0x29d   : > { %784 = vmax.xlane.f32.xlu1 %v783_v0  ;;  %1024 = vadd.xlane.f32.xlu0 %v1023_v13  ;;  %v2180_v15 = vpop.eup %1596  ;;  %v1041_v56 = vadd.f32 %v2175_v7, %v2172_v49 }
 0x29e   : > { %v2184_v19 = vpop.eup %1598 }
 0x29f   : > { %v2186_v4 = vpop.eup %1600  ;;  %v1044_v35 = vadd.f32 %v2184_v19, %v2180_v15 }
 0x2a0   : > { %v2190_v5 = vpop.eup %1602 }
 0x2a1   : > { %787 = vmax.xlane.f32.xlu1 %v786_v17  ;;  %v2192_v51 = vpop.eup %1604  ;;  %v1035_v53 = vadd.f32 %v2190_v5, %v2186_v4 }
 0x2a2   : > { %v2196_v52 = vpop.eup %1606 }
 0x2a3   : > { %v2198_v0 = vpop.eup %1608  ;;  %v1038_v6 = vadd.f32 %v2196_v52, %v2192_v51 }
 0x2a4   : > { %v2202_v57 = vpop.eup %1610 }
 0x2a5   : > { %1042 = vadd.xlane.f32.xlu1 %v1041_v56  ;;  %v2206_v36 = vpop.eup %1612  ;;  %v1032_v16 = vadd.f32 %v2202_v57, %v2198_v0 }
 0x2a6   : > { %v2210_v32 = vpop.eup %1614 }
 0x2a7   : > { %v1026_v22 = vadd.f32 %v2210_v32, %v2206_v36 }
 0x2a9   : > { %1045 = vadd.xlane.f32.xlu1 %v1044_v35  ;;  %v2493_v35 = vld [vmem:[#allocation19_spill] sm:$0xff] }
 0x2ad   : > { %1036 = vadd.xlane.f32.xlu1 %v1035_v53 }
 0x2af   : > { %v827_v25 = vpop.xlane.xlu1 %826 }
 0x2b0   : > { %v891_v13 = vsub.f32 %v2012_v45, %v827_v25  ;;  %v892_v59 = vsub.f32 %v2492_v14, %v827_v25 }
 0x2b1   : > { %1039 = vadd.xlane.f32.xlu1 %v1038_v6 }
 0x2b2   : > { %v1015_v2 = vmul.f32 1.442695, %v891_v13  ;;  %v1017_v8 = vmul.f32 1.442695, %v892_v59 }
 0x2b3   : > { %v821_v29 = vpop.xlane.xlu1 %820  ;;  %v830_v17 = vpop.xlane.xlu0 %829 }
 0x2b4   : > { %1616 = vpow2.f32 %v1015_v2  ;;  %v887_v56 = vsub.f32 %v2004_v33, %v821_v29  ;;  %v888_v53 = vsub.f32 %v2493_v35, %v821_v29  ;;  %v893_v45 = vsub.f32 %v2018_v54, %v830_v17 }
 0x2b5   : > { %1618 = vpow2.f32 %v1017_v8  ;;  %v894_v25 = vsub.f32 %v2022_v41, %v830_v17  ;;  %1033 = vadd.xlane.f32.xlu1 %v1032_v16 }
 0x2b6   : > { %v1007_v6 = vmul.f32 1.442695, %v887_v56  ;;  %v1009_v13 = vmul.f32 1.442695, %v888_v53  ;;  %v1019_v14 = vmul.f32 1.442695, %v893_v45 }
 0x2b7   : > { %v1021_v59 = vmul.f32 1.442695, %v894_v25  ;;  %v824_v58 = vpop.xlane.xlu1 %823 }
 0x2b8   : > { %1620 = vpow2.f32 %v1007_v6  ;;  %v889_v2 = vsub.f32 %v2008_v39, %v824_v58  ;;  %v890_v33 = vsub.f32 %v2010_v42, %v824_v58  ;;  %v2494_v6 = vld [vmem:[#allocation16_spill] sm:$0xff] }
 0x2b9   : > { %1622 = vpow2.f32 %v1009_v13  ;;  %1027 = vadd.xlane.f32.xlu1 %v1026_v22 }
 0x2ba   : > { %1624 = vpow2.f32 %v1019_v14  ;;  %v1011_v54 = vmul.f32 1.442695, %v889_v2  ;;  %v1013_v8 = vmul.f32 1.442695, %v890_v33 }
 0x2bb   : > { %1626 = vpow2.f32 %v1021_v59  ;;  %v815_v41 = vpop.xlane.xlu1 %814 }
 0x2bc   : > { %1628 = vpow2.f32 %v1011_v54  ;;  %v883_v29 = vsub.f32 %v1996_v21, %v815_v41  ;;  %v884_v17 = vsub.f32 %v1998_v24, %v815_v41 }
 0x2bd   : > { %1630 = vpow2.f32 %v1013_v8 }
 0x2be   : > { %v999_v16 = vmul.f32 1.442695, %v883_v29  ;;  %v1001_v56 = vmul.f32 1.442695, %v884_v17  ;;  %v2496_v29 = vld [vmem:[#allocation18_spill] sm:$0xff] }
 0x2bf   : > { %v818_v35 = vpop.xlane.xlu1 %817 }
 0x2c0   : > { %1632 = vpow2.f32 %v999_v16  ;;  %v885_v39 = vsub.f32 %v2000_v27, %v818_v35  ;;  %v886_v42 = vsub.f32 %v2002_v30, %v818_v35 }
 0x2c1   : > { %v2224_v58 = vpop.eup %1616  ;;  %1634 = vpow2.f32 %v1001_v56 }
 0x2c2   : > { %v2226_v22 = vpop.eup %1618  ;;  %v1003_v53 = vmul.f32 1.442695, %v885_v39  ;;  %v1005_v45 = vmul.f32 1.442695, %v886_v42 }
 0x2c3   : > { %v809_v25 = vpop.xlane.xlu1 %808  ;;  %v1113_v21 = vadd.f32 %v2226_v22, %v2224_v58 }
 0x2c4   : > { %1636 = vpow2.f32 %v1003_v53  ;;  %v879_v24 = vsub.f32 %v1988_v9, %v809_v25  ;;  %v880_v13 = vsub.f32 %v2494_v6, %v809_v25  ;;  %v2495_v9 = vld [vmem:[#allocation17_spill] sm:$0xff]  ;;  %v2497_v25 = vld [vmem:[#allocation12_spill] sm:$0xff] }
 0x2c5   : > { %v2232_v14 = vpop.eup %1620  ;;  %1638 = vpow2.f32 %v1005_v45  ;;  %1114 = vadd.xlane.f32.xlu0 %v1113_v21 }
 0x2c6   : > { %v2234_v27 = vpop.eup %1622  ;;  %v991_v30 = vmul.f32 1.442695, %v879_v24  ;;  %v993_v59 = vmul.f32 1.442695, %v880_v13  ;;  %v2498_v24 = vld [vmem:[#allocation13_spill] sm:$0xff] }
 0x2c7   : > { %v2236_v2 = vpop.eup %1624  ;;  %v812_v33 = vpop.xlane.xlu1 %811  ;;  %v1107_v54 = vadd.f32 %v2234_v27, %v2232_v14 }
 0x2c8   : > { %v2240_v8 = vpop.eup %1626  ;;  %1640 = vpow2.f32 %v991_v30  ;;  %v881_v41 = vsub.f32 %v2495_v9, %v812_v33  ;;  %v882_v17 = vsub.f32 %v2496_v29, %v812_v33 }
 0x2c9   : > { %v2244_v16 = vpop.eup %1628  ;;  %1642 = vpow2.f32 %v993_v59  ;;  %1108 = vadd.xlane.f32.xlu0 %v1107_v54  ;;  %v1116_v56 = vadd.f32 %v2240_v8, %v2236_v2 }
 0x2ca   : > { %v2248_v35 = vpop.eup %1630  ;;  %v995_v39 = vmul.f32 1.442695, %v881_v41  ;;  %v997_v42 = vmul.f32 1.442695, %v882_v17  ;;  %v2500_v41 = vld [vmem:[#allocation14_spill] sm:$0xff]  ;;  %v2501_v17 = vld [vmem:[#allocation15_spill] sm:$0xff] }
 0x2cb   : > { %1117 = vadd.xlane.f32.xlu1 %v1116_v56  ;;  %v803_v53 = vpop.xlane.xlu1 %802  ;;  %v1110_v45 = vadd.f32 %v2248_v35, %v2244_v16 }
 0x2cc   : > { %1644 = vpow2.f32 %v995_v39  ;;  %v875_v21 = vsub.f32 %v2497_v25, %v803_v53  ;;  %v876_v6 = vsub.f32 %v2498_v24, %v803_v53  ;;  %v2504_v24 = vld [vmem:[#allocation8_spill] sm:$0xff] }
 0x2cd   : > { %v2254_v13 = vpop.eup %1632  ;;  %1646 = vpow2.f32 %v997_v42 }
 0x2ce   : > { %2499 = vst [vmem:[#allocation4_spill] sm:$0xff] %v2254_v13  ;;  %v2256_v30 = vpop.eup %1634  ;;  %v983_v59 = vmul.f32 1.442695, %v875_v21  ;;  %v985_v33 = vmul.f32 1.442695, %v876_v6 }
 0x2cf   : > { %1111 = vadd.xlane.f32.xlu1 %v1110_v45  ;;  %v806_v54 = vpop.xlane.xlu1 %805  ;;  %v1101_v9 = vadd.f32 %v2256_v30, %v2254_v13 }
 0x2d0   : > { %1648 = vpow2.f32 %v983_v59  ;;  %v877_v29 = vsub.f32 %v2500_v41, %v806_v54  ;;  %v878_v56 = vsub.f32 %v2501_v17, %v806_v54  ;;  %v2505_v59 = vld [vmem:[#allocation9_spill] sm:$0xff] }
 0x2d1   : > { %v2262_v39 = vpop.eup %1636  ;;  %1650 = vpow2.f32 %v985_v33  ;;  %1102 = vadd.xlane.f32.xlu0 %v1101_v9 }
 0x2d2   : > { %2502 = vst [vmem:[#allocation5_spill] sm:$0xff] %v2262_v39  ;;  %v2264_v53 = vpop.eup %1638  ;;  %v987_v42 = vmul.f32 1.442695, %v877_v29  ;;  %v989_v25 = vmul.f32 1.442695, %v878_v56  ;;  %v2507_v56 = vld [vmem:[#allocation10_spill] sm:$0xff] }
 0x2d3   : > { %2503 = vst [vmem:[#allocation7_spill] sm:$0xff] %v2264_v53  ;;  %v797_v21 = vpop.xlane.xlu1 %796  ;;  %v1104_v45 = vadd.f32 %v2264_v53, %v2262_v39 }
 0x2d4   : > { %1652 = vpow2.f32 %v987_v42  ;;  %v871_v6 = vsub.f32 %v2504_v24, %v797_v21  ;;  %v872_v13 = vsub.f32 %v2505_v59, %v797_v21  ;;  %v2508_v42 = vld [vmem:[#allocation11_spill] sm:$0xff] }
 0x2d5   : > { %v2270_v41 = vpop.eup %1640  ;;  %1654 = vpow2.f32 %v989_v25  ;;  %1105 = vadd.xlane.f32.xlu1 %v1104_v45 }
 0x2d6   : > { %2506 = vst [vmem:[#allocation6_spill] sm:$0xff] %v2270_v41  ;;  %v2272_v54 = vpop.eup %1642  ;;  %v975_v33 = vmul.f32 1.442695, %v871_v6  ;;  %v977_v9 = vmul.f32 1.442695, %v872_v13 }
 0x2d7   : > { %v800_v17 = vpop.xlane.xlu1 %799  ;;  %v1095_v29 = vadd.f32 %v2272_v54, %v2270_v41 }
 0x2d8   : > { %1656 = vpow2.f32 %v975_v33  ;;  %v873_v39 = vsub.f32 %v2507_v56, %v800_v17  ;;  %v874_v53 = vsub.f32 %v2508_v42, %v800_v17 }
 0x2d9   : > { %v2278_v24 = vpop.eup %1644  ;;  %1658 = vpow2.f32 %v977_v9  ;;  %1096 = vadd.xlane.f32.xlu0 %v1095_v29 }
 0x2da   : > { %2509 = vst [vmem:[#allocation20_spill] sm:$0xff] %v2278_v24  ;;  %v2280_v21 = vpop.eup %1646  ;;  %v979_v25 = vmul.f32 1.442695, %v873_v39  ;;  %v981_v45 = vmul.f32 1.442695, %v874_v53 }
 0x2db   : > { %2510 = vst [vmem:[#allocation19_spill] sm:$0xff] %v2280_v21  ;;  %v1098_v13 = vadd.f32 %v2280_v21, %v2278_v24 }
 0x2dc   : > { %1660 = vpow2.f32 %v979_v25 }
 0x2dd   : > { %v2284_v6 = vpop.eup %1648  ;;  %1662 = vpow2.f32 %v981_v45  ;;  %1099 = vadd.xlane.f32.xlu1 %v1098_v13 }
 0x2de   : > { %2511 = vst [vmem:[#allocation16_spill] sm:$0xff] %v2284_v6  ;;  %v2286_v59 = vpop.eup %1650 }
 0x2df   : > { %2512 = vst [vmem:[#allocation17_spill] sm:$0xff] %v2286_v59  ;;  %v1089_v33 = vadd.f32 %v2286_v59, %v2284_v6 }
 0x2e1   : > { %v2290_v17 = vpop.eup %1652  ;;  %1090 = vadd.xlane.f32.xlu0 %v1089_v33 }
 0x2e2   : > { %2513 = vst [vmem:[#allocation18_spill] sm:$0xff] %v2290_v17  ;;  %v2292_v9 = vpop.eup %1654 }
 0x2e3   : > { %2514 = vst [vmem:[#allocation12_spill] sm:$0xff] %v2292_v9  ;;  %v1092_v39 = vadd.f32 %v2292_v9, %v2290_v17 }
 0x2e5   : > { %v2296_v53 = vpop.eup %1656  ;;  %1093 = vadd.xlane.f32.xlu1 %v1092_v39 }
 0x2e6   : > { %2515 = vst [vmem:[#allocation13_spill] sm:$0xff] %v2296_v53  ;;  %v2298_v29 = vpop.eup %1658 }
 0x2e7   : > { %2516 = vst [vmem:[#allocation14_spill] sm:$0xff] %v2298_v29  ;;  %v1083_v56 = vadd.f32 %v2298_v29, %v2296_v53 }
 0x2e9   : > { %v2302_v42 = vpop.eup %1660  ;;  %1084 = vadd.xlane.f32.xlu0 %v1083_v56 }
 0x2ea   : > { %2517 = vst [vmem:[#allocation15_spill] sm:$0xff] %v2302_v42  ;;  %v2304_v25 = vpop.eup %1662 }
 0x2eb   : > { %2518 = vst [vmem:[#allocation8_spill] sm:$0xff] %v2304_v25  ;;  %v1086_v45 = vadd.f32 %v2304_v25, %v2302_v42 }
 0x2ed   : > { %1087 = vadd.xlane.f32.xlu1 %v1086_v45 }
 0x2fe   : > { %v1055_v13 = vpop.xlane.xlu1 %1054 }
 0x302   : > { %v1058_v33 = vpop.xlane.xlu1 %1057 }
 0x306   : > { %v1061_v6 = vpop.xlane.xlu1 %1060 }
 0x30a   : > { %v1064_v17 = vpop.xlane.xlu1 %1063 }
 0x30b   : > { %1664 = vrcp.f32 %v1064_v17 }
 0x30e   : > { %v1067_v9 = vpop.xlane.xlu1 %1066 }
 0x30f   : > { %1666 = vrcp.f32 %v1067_v9 }
 0x310   : > { %1668 = vrcp.f32 %v1061_v6 }
 0x312   : > { %v1070_v39 = vpop.xlane.xlu1 %1069 }
 0x313   : > { %1670 = vrcp.f32 %v1070_v39 }
 0x314   : > { %1672 = vrcp.f32 %v1058_v33 }
 0x315   : > { %1674 = vrcp.f32 %v1055_v13 }
 0x316   : > { %v791_v53 = vpop.xlane.xlu1 %790 }
 0x317   : > { %v867_v29 = vsub.f32 %v1956_v43, %v791_v53  ;;  %v868_v56 = vsub.f32 %v1958_v44, %v791_v53 }
 0x318   : > { %v1665_v17 = vpop.eup %1664 }
 0x319   : > { %v967_v59 = vmul.f32 1.442695, %v867_v29  ;;  %v969_v41 = vmul.f32 1.442695, %v868_v56  ;;  %v1178_v44 = vmul.f32 %v1665_v17, %v2092_v50 }
 0x31a   : > { %v794_v45 = vpop.xlane.xlu1 %793 }
 0x31b   : > { %1676 = vpow2.f32 %v967_v59  ;;  %v869_v42 = vsub.f32 %v1962_v46, %v794_v45  ;;  %v870_v25 = vsub.f32 %v1964_v47, %v794_v45 }
 0x31c   : > { %1678 = vpow2.f32 %v969_v41  ;;  %v1667_v39 = vpop.eup %1666 }
 0x31d   : > { %v971_v6 = vmul.f32 1.442695, %v869_v42  ;;  %v973_v9 = vmul.f32 1.442695, %v870_v25  ;;  %v1669_v21 = vpop.eup %1668  ;;  %v1180_v53 = vmul.f32 %v1667_v39, %v2104_v28  ;;  %v1179_v46 = vmul.f32 %v1667_v39, %v2102_v12 }
 0x31e   : > { %v1049_v24 = vpop.xlane.xlu1 %1048  ;;  %v1176_v25 = vmul.f32 %v1669_v21, %v2080_v34 }
 0x31f   : > { %1680 = vpow2.f32 %v971_v6 }
 0x320   : > { %v1671_v43 = vpop.eup %1670  ;;  %1682 = vpow2.f32 %v973_v9  ;;  %v1228_v13 = vpack.c.bf16 %v1178_v44, %v1176_v25 }
 0x321   : > { %v1182_v59 = vmul.f32 %v1671_v43, %v2112_v1  ;;  %v1181_v47 = vmul.f32 %v1671_v43, %v2110_v63  ;;  %1684 = vrcp.f32 %v1049_v24  ;;  %v1673_v33 = vpop.eup %1672  ;;  %v1177_v63 = vmul.f32 %v1665_v17, %v2090_v23 }
 0x322   : > { %v1052_v41 = vpop.xlane.xlu1 %1051  ;;  %v1675_v56 = vpop.eup %1674  ;;  %v1174_v34 = vmul.f32 %v1673_v33, %v2072_v31  ;;  %v1175_v43 = vmul.f32 %v1669_v21, %v2078_v20 }
 0x323   : > { %1686 = vrcp.f32 %v1052_v41  ;;  %v1230_v29 = vpack.c.bf16 %v1182_v59, %v1180_v53  ;;  %v1229_v42 = vpack.c.bf16 %v1181_v47, %v1179_v46  ;;  %v1172_v44 = vmul.f32 %v1675_v56, %v2064_v26 }
 0x324   : > { %v1227_v17 = vpack.c.bf16 %v1177_v63, %v1175_v43  ;;  %v1173_v26 = vmul.f32 %v1673_v33, %v2070_v61  ;;  %v1031_v61 = vpop.xlane.xlu0 %1030 }
 0x325   : > { %1259 = vmatprep.subr.bf16.mxu1 %v1230_v29  ;;  %v1226_v46 = vpack.c.bf16 %v1174_v34, %v1172_v44  ;;  %v1171_v29 = vmul.f32 %v1675_v56, %v2062_v62 }
 0x326   : > { %1260 = vmatpush1.bf16.xpose.msra.mxu1 %v1229_v42  ;;  %v785_v50 = vpop.xlane.xlu1 %784 }
 0x327   : > { %v863_v28 = vsub.f32 %v1944_v37, %v785_v50  ;;  %v864_v1 = vsub.f32 %v1946_v38, %v785_v50  ;;  %1261 = vmatprep.subr.bf16.mxu1 %v1228_v13  ;;  %v1225_v25 = vpack.c.bf16 %v1173_v26, %v1171_v29 }
 0x328   : > { %v2320_v12 = vpop.eup %1676 }
 0x329   : > { %v2323_v24 = vpop.eup %1678  ;;  %v959_v45 = vmul.f32 1.442695, %v863_v28  ;;  %v961_v6 = vmul.f32 1.442695, %v864_v1 }
 0x32a   : > { %v788_v9 = vpop.xlane.xlu1 %787  ;;  %v1077_v39 = vadd.f32 %v2323_v24, %v2320_v12 }
 0x32b   : > { %1688 = vpow2.f32 %v959_v45  ;;  %v865_v37 = vsub.f32 %v2491_v3, %v788_v9  ;;  %v866_v38 = vsub.f32 %v2490_v11, %v788_v9  ;;  %v1025_v9 = vpop.xlane.xlu0 %1024 }
 0x32c   : > { %v2332_v23 = vpop.eup %1680  ;;  %1690 = vpow2.f32 %v961_v6  ;;  %1078 = vadd.xlane.f32.xlu0 %v1077_v39 }
 0x32d   : > { %v2334_v53 = vpop.eup %1682  ;;  %v963_v31 = vmul.f32 1.442695, %v865_v37  ;;  %v965_v59 = vmul.f32 1.442695, %v866_v38 }
 0x32e   : > { %1262 = vmatpush1.bf16.xpose.msra.mxu1 %v1227_v17  ;;  %v1043_v47 = vpop.xlane.xlu1 %1042  ;;  %v1080_v20 = vadd.f32 %v2334_v53, %v2332_v23  ;;  %v1685_v3 = vpop.eup %1684 }
 0x32f   : > { %1692 = vpow2.f32 %v963_v31  ;;  %1263 = vmatprep.subr.bf16.mxu1 %v1226_v46  ;;  %v1168_v42 = vmul.f32 %v1685_v3, %v2135_v40  ;;  %v1167_v33 = vmul.f32 %v1685_v3, %v2126_v60 }
 0x330   : > { %v1687_v11 = vpop.eup %1686  ;;  %1694 = vpow2.f32 %v965_v59  ;;  %1081 = vadd.xlane.f32.xlu1 %v1080_v20 }
 0x331   : > { %1696 = vrcp.f32 %v1043_v47  ;;  %v1170_v21 = vmul.f32 %v1687_v11, %v2152_v48  ;;  %v1169_v1 = vmul.f32 %v1687_v11, %v2144_v18 }
 0x332   : > { %v1046_v41 = vpop.xlane.xlu1 %1045 }
 0x333   : > { %1698 = vrcp.f32 %v1046_v41  ;;  %v1224_v13 = vpack.c.bf16 %v1170_v21, %v1168_v42  ;;  %v1223_v56 = vpack.c.bf16 %v1169_v1, %v1167_v33 }
 0x336   : > { %1264 = vmatpush1.bf16.xpose.msra.mxu1 %v1225_v25  ;;  %v1037_v50 = vpop.xlane.xlu1 %1036 }
 0x337   : > { %1265 = vmatprep.subr.bf16.mxu1 %v1224_v13  ;;  %1700 = vrcp.f32 %v1037_v50  ;;  %v2519_v50 = vld [vmem:[#allocation22_spill] sm:$0xff] }
 0x338   : > { %v2342_v28 = vpop.eup %1688 }
 0x339   : > { %v2345_v63 = vpop.eup %1690 }
 0x33a   : > { %v1040_v48 = vpop.xlane.xlu1 %1039  ;;  %v1071_v62 = vadd.f32 %v2345_v63, %v2342_v28 }
 0x33b   : > { %1702 = vrcp.f32 %v1040_v48 }
 0x33c   : > { %v2350_v40 = vpop.eup %1692  ;;  %1072 = vadd.xlane.f32.xlu0 %v1071_v62  ;;  %1704 = vrcp.f32 %v1031_v61 }
 0x33d   : > { %v2352_v45 = vpop.eup %1694 }
 0x33e   : > { %v1697_v6 = vpop.eup %1696  ;;  %1266 = vmatpush1.bf16.xpose.msra.mxu1 %v1223_v56  ;;  %v1034_v18 = vpop.xlane.xlu1 %1033  ;;  %v1074_v34 = vadd.f32 %v2352_v45, %v2350_v40 }
 0x33f   : > { %1706 = vrcp.f32 %v1034_v18  ;;  %v1164_v60 = vmul.f32 %v1697_v6, %v2175_v7  ;;  %v1163_v37 = vmul.f32 %v1697_v6, %v2172_v49  ;;  %v368_v25 = vpop.f32.mrf.mxu1 }
 0x340   : > { %v1699_v39 = vpop.eup %1698  ;;  %1075 = vadd.xlane.f32.xlu1 %v1074_v34  ;;  %1708 = vrcp.f32 %v1025_v9 }
 0x341   : > { %v1166_v43 = vmul.f32 %v1699_v39, %v2184_v19  ;;  %v1165_v38 = vmul.f32 %v1699_v39, %v2180_v15  ;;  %v370_v13 = vpop.f32.mrf.mxu1 }
 0x342   : > { %v1028_v44 = vpop.xlane.xlu1 %1027 }
 0x343   : > { %1710 = vrcp.f32 %v1028_v44  ;;  %v1222_v17 = vpack.c.bf16 %v1166_v43, %v1164_v60  ;;  %v1221_v31 = vpack.c.bf16 %v1165_v38, %v1163_v37 }
 0x344   : > { %v1701_v59 = vpop.eup %1700 }
 0x345   : > { %1267 = vmatprep.subr.bf16.mxu1 %v1222_v17  ;;  %v1160_v47 = vmul.f32 %v1701_v59, %v2190_v5  ;;  %v1159_v7 = vmul.f32 %v1701_v59, %v2186_v4 }
 0x346   : > { %1268 = vmatpush1.bf16.xpose.msra.mxu1 %v1221_v31 }
 0x348   : > { %v1703_v46 = vpop.eup %1702 }
 0x349   : > { %v1162_v20 = vmul.f32 %v1703_v46, %v2196_v52  ;;  %v1161_v19 = vmul.f32 %v1703_v46, %v2192_v51  ;;  %v1705_v49 = vpop.eup %1704 }
 0x34a   : > { %v1156_v26 = vmul.f32 %v1705_v49, %v2140_v10  ;;  %v1155_v51 = vmul.f32 %v1705_v49, %v2138_v55  ;;  %v1495_v10 = vpack.c.bf16 %v370_v13, %v368_v25  ;;  %v2520_v55 = vld [vmem:[#allocation21_spill] sm:$0xff]  ;;  %v2524_v25 = vld [vmem:[#allocation19_spill] sm:$0xff] }
 0x34b   : > { %v1220_v3 = vpack.c.bf16 %v1162_v20, %v1160_v47  ;;  %v1219_v15 = vpack.c.bf16 %v1161_v19, %v1159_v7 }
 0x34c   : > { %v1707_v11 = vpop.eup %1706  ;;  %1496 = vst.sshfl [vmem:[#allocation3] sm:$0x33 pattern:$0x76325410] %v1495_v10 }
 0x34d   : > { %1269 = vmatprep.subr.bf16.mxu1 %v1220_v3  ;;  %v1158_v21 = vmul.f32 %v1707_v11, %v2202_v57  ;;  %v1709_v29 = vpop.eup %1708  ;;  %v1157_v52 = vmul.f32 %v1707_v11, %v2198_v0 }
 0x34e   : > { %1270 = vmatpush1.bf16.xpose.msra.mxu1 %v1219_v15  ;;  %v1115_v41 = vpop.xlane.xlu0 %1114  ;;  %v1152_v1 = vmul.f32 %v1709_v29, %v2519_v50  ;;  %v1151_v56 = vmul.f32 %v1709_v29, %v2520_v55  ;;  %v2521_v15 = vld [vmem:[#allocation7_spill] sm:$0xff]  ;;  %v2522_v29 = vld [vmem:[#allocation5_spill] sm:$0xff] }
 0x34f   : > { %v1218_v42 = vpack.c.bf16 %v1158_v21, %v1156_v26  ;;  %1712 = vrcp.f32 %v1115_v41  ;;  %v1217_v48 = vpack.c.bf16 %v1157_v52, %v1155_v51 }
 0x350   : > { %v1711_v5 = vpop.eup %1710 }
 0x351   : > { %1271 = vmatprep.subr.bf16.mxu1 %v1218_v42  ;;  %v1154_v4 = vmul.f32 %v1711_v5, %v2210_v32  ;;  %v1153_v33 = vmul.f32 %v1711_v5, %v2206_v36  ;;  %v2523_v5 = vld [vmem:[#allocation4_spill] sm:$0xff] }
 0x352   : > { %v1109_v57 = vpop.xlane.xlu0 %1108 }
 0x353   : > { %v1216_v62 = vpack.c.bf16 %v1154_v4, %v1152_v1  ;;  %v1215_v6 = vpack.c.bf16 %v1153_v33, %v1151_v56  ;;  %v2372_v18 = vld.sshfl [vmem:[#allocation3] sm:$0x33 pattern:$0x76325410]  ;;  %v2525_v1 = vld [vmem:[#allocation20_spill] sm:$0xff] }
 0x354   : > { %v1118_v61 = vpop.xlane.xlu1 %1117  ;;  %v1256_v9 = vcombine.high %v2372_v18, %v2372_v18  ;;  %v2528_v33 = vld [vmem:[#allocation12_spill] sm:$0xff] }
 0x355   : > { %1714 = vrcp.f32 %v1118_v61 }
 0x356   : > { %1272 = vmatpush1.bf16.xpose.msra.mxu1 %v1217_v48  ;;  %1716 = vrcp.f32 %v1109_v57  ;;  %1291 = vmatprep.mubr.bf16.mxu1 %v1256_v9  ;;  %v2526_v57 = vld [vmem:[#allocation6_spill] sm:$0xff] }
 0x357   : > { %1273 = vmatprep.subr.bf16.mxu1 %v1216_v62  ;;  %v2527_v62 = vld [vmem:[#allocation17_spill] sm:$0xff] }
 0x358   : > { %v1112_v0 = vpop.xlane.xlu1 %1111 }
 0x359   : > { %1718 = vrcp.f32 %v1112_v0 }
 0x35a   : > { %v1103_v32 = vpop.xlane.xlu0 %1102 }
 0x35b   : > { %1720 = vrcp.f32 %v1103_v32 }
 0x35c   : > { %v1713_v39 = vpop.eup %1712 }
 0x35d   : > { %v1212_v36 = vmul.f32 %v1713_v39, %v2226_v22  ;;  %v1211_v38 = vmul.f32 %v1713_v39, %v2224_v58  ;;  %v2530_v39 = vld [vmem:[#allocation16_spill] sm:$0xff] }
 0x35e   : > { %v1106_v34 = vpop.xlane.xlu1 %1105  ;;  %1274 = vmatpush1.bf16.xpose.msra.mxu1 %v1215_v6  ;;  %v2529_v6 = vld [vmem:[#allocation18_spill] sm:$0xff] }
 0x35f   : > { %1722 = vrcp.f32 %v1106_v34 }
 0x362   : > { %v1715_v60 = vpop.eup %1714  ;;  %v1097_v43 = vpop.xlane.xlu0 %1096 }
 0x363   : > { %v1214_v37 = vmul.f32 %v1715_v60, %v2240_v8  ;;  %v1213_v44 = vmul.f32 %v1715_v60, %v2236_v2  ;;  %v1717_v17 = vpop.eup %1716  ;;  %1724 = vrcp.f32 %v1097_v43  ;;  %v2531_v43 = vld [vmem:[#allocation14_spill] sm:$0xff] }
 0x364   : > { %v1208_v20 = vmul.f32 %v1717_v17, %v2234_v27  ;;  %v1207_v49 = vmul.f32 %v1717_v17, %v2232_v14 }
 0x365   : > { %v1246_v31 = vpack.c.bf16 %v1214_v37, %v1212_v36  ;;  %v1245_v59 = vpack.c.bf16 %v1213_v44, %v1211_v38  ;;  %v2532_v37 = vld [vmem:[#allocation8_spill] sm:$0xff] }
 0x366   : > { %v1719_v46 = vpop.eup %1718  ;;  %v1100_v47 = vpop.xlane.xlu1 %1099 }
 0x367   : > { %1275 = vmatprep.subr.bf16.mxu1 %v1246_v31  ;;  %1726 = vrcp.f32 %v1100_v47  ;;  %v1210_v7 = vmul.f32 %v1719_v46, %v2248_v35  ;;  %v1209_v58 = vmul.f32 %v1719_v46, %v2244_v16  ;;  %v2533_v31 = vld [vmem:[#allocation15_spill] sm:$0xff]  ;;  %v2534_v46 = vld [vmem:[#allocation13_spill] sm:$0xff] }
 0x368   : > { %1276 = vmatpush2.bf16.xpose.msra.mxu1 %v1245_v59  ;;  %v1721_v19 = vpop.eup %1720 }
 0x369   : > { %v1244_v22 = vpack.c.bf16 %v1210_v7, %v1208_v20  ;;  %v1204_v3 = vmul.f32 %v1721_v19, %v2256_v30  ;;  %v1243_v21 = vpack.c.bf16 %v1209_v58, %v1207_v49  ;;  %v1203_v52 = vmul.f32 %v1721_v19, %v2523_v5 }
 0x36a   : > { %v1091_v8 = vpop.xlane.xlu0 %1090 }
 0x36b   : > { %1277 = vmatprep.subr.bf16.mxu1 %v1244_v22  ;;  %1728 = vrcp.f32 %v1091_v8 }
 0x36c   : > { %v1723_v2 = vpop.eup %1722 }
 0x36d   : > { %v1206_v11 = vmul.f32 %v1723_v2, %v2521_v15  ;;  %v1205_v42 = vmul.f32 %v1723_v2, %v2522_v29 }
 0x36e   : > { %v1094_v26 = vpop.xlane.xlu1 %1093 }
 0x36f   : > { %1730 = vrcp.f32 %v1094_v26  ;;  %v1242_v27 = vpack.c.bf16 %v1206_v11, %v1204_v3  ;;  %v1241_v51 = vpack.c.bf16 %v1205_v42, %v1203_v52 }
 0x370   : > { %1278 = vmatpush2.bf16.xpose.msra.mxu1 %v1243_v21  ;;  %v1725_v35 = vpop.eup %1724 }
 0x371   : > { %1279 = vmatprep.subr.bf16.mxu1 %v1242_v27  ;;  %v1200_v14 = vmul.f32 %v1725_v35, %v2272_v54  ;;  %v1199_v48 = vmul.f32 %v1725_v35, %v2526_v57 }
 0x372   : > { %v1085_v41 = vpop.xlane.xlu0 %1084 }
 0x373   : > { %1732 = vrcp.f32 %v1085_v41 }
 0x374   : > { %v1727_v16 = vpop.eup %1726 }
 0x375   : > { %v1202_v30 = vmul.f32 %v1727_v16, %v2524_v25  ;;  %v1201_v10 = vmul.f32 %v1727_v16, %v2525_v1 }
 0x376   : > { %v1088_v4 = vpop.xlane.xlu1 %1087 }
 0x377   : > { %1734 = vrcp.f32 %v1088_v4  ;;  %v1240_v13 = vpack.c.bf16 %v1202_v30, %v1200_v14  ;;  %v1239_v55 = vpack.c.bf16 %v1201_v10, %v1199_v48 }
 0x378   : > { %1280 = vmatpush2.bf16.xpose.msra.mxu1 %v1241_v51  ;;  %v1729_v50 = vpop.eup %1728 }
 0x379   : > { %1281 = vmatprep.subr.bf16.mxu1 %v1240_v13  ;;  %v1196_v0 = vmul.f32 %v1729_v50, %v2527_v62  ;;  %v1195_v60 = vmul.f32 %v1729_v50, %v2530_v39 }
 0x37c   : > { %v1731_v61 = vpop.eup %1730 }
 0x37d   : > { %v1198_v32 = vmul.f32 %v1731_v61, %v2528_v33  ;;  %v1197_v34 = vmul.f32 %v1731_v61, %v2529_v6 }
 0x37f   : > { %v1238_v54 = vpack.c.bf16 %v1198_v32, %v1196_v0  ;;  %v1237_v44 = vpack.c.bf16 %v1197_v34, %v1195_v60 }
 0x380   : > { %1282 = vmatpush2.bf16.xpose.msra.mxu1 %v1239_v55  ;;  %v1733_v56 = vpop.eup %1732 }
 0x381   : > { %1283 = vmatprep.subr.bf16.mxu1 %v1238_v54  ;;  %v1192_v36 = vmul.f32 %v1733_v56, %v2531_v43  ;;  %v1191_v47 = vmul.f32 %v1733_v56, %v2534_v46 }
 0x384   : > { %v1735_v9 = vpop.eup %1734 }
 0x385   : > { %v1194_v38 = vmul.f32 %v1735_v9, %v2532_v37  ;;  %v1193_v59 = vmul.f32 %v1735_v9, %v2533_v31 }
 0x387   : > { %v1236_v17 = vpack.c.bf16 %v1194_v38, %v1192_v36  ;;  %v1235_v20 = vpack.c.bf16 %v1193_v59, %v1191_v47 }
 0x388   : > { %1284 = vmatpush2.bf16.xpose.msra.mxu1 %v1237_v44 }
 0x389   : > { %1285 = vmatprep.subr.bf16.mxu1 %v1236_v17 }
 0x390   : > { %1286 = vmatpush2.bf16.xpose.msra.mxu1 %v1235_v20 }
 0x3b5   : > { %v1079_v7 = vpop.xlane.xlu0 %1078 }
 0x3b6   : > { %1736 = vrcp.f32 %v1079_v7 }
 0x3b9   : > { %v1082_v22 = vpop.xlane.xlu1 %1081 }
 0x3ba   : > { %1738 = vrcp.f32 %v1082_v22 }
 0x3c3   : > { %v1737_v19 = vpop.eup %1736 }
 0x3c4   : > { %v1188_v2 = vmul.f32 %v1737_v19, %v2323_v24  ;;  %v1187_v3 = vmul.f32 %v1737_v19, %v2320_v12 }
 0x3c5   : > { %v1073_v8 = vpop.xlane.xlu0 %1072 }
 0x3c6   : > { %1740 = vrcp.f32 %v1073_v8 }
 0x3c7   : > { %v1739_v58 = vpop.eup %1738 }
 0x3c8   : > { %v1190_v49 = vmul.f32 %v1739_v58, %v2334_v53  ;;  %v1189_v15 = vmul.f32 %v1739_v58, %v2332_v23  ;;  %v1302_v23 = vld [vmem:[%s2434_s2] sm:$0xf] }
 0x3c9   : > { %v1076_v11 = vpop.xlane.xlu1 %1075  ;;  %1305 = vperm.xlu0 %1550, %v1302_v23  }
 0x3ca   : > { %1742 = vrcp.f32 %v1076_v11  ;;  %v1234_v26 = vpack.c.bf16 %v1190_v49, %v1188_v2  ;;  %v1233_v21 = vpack.c.bf16 %v1189_v15, %v1187_v3 }
 0x3cc   : > { %1287 = vmatprep.subr.bf16.mxu1 %v1234_v26 }
 0x3cd   : > { %1288 = vmatpush2.bf16.xpose.msra.mxu1 %v1233_v21 }
 0x3d3   : > { %v1741_v27 = vpop.eup %1740 }
 0x3d4   : > { %v1184_v41 = vmul.f32 %v1741_v27, %v2345_v63  ;;  %v1183_v24 = vmul.f32 %v1741_v27, %v2342_v28  ;;  %v1516_v28 = vld [vmem:[%s2433_s1 + $0x8] sm:$0xf] }
 0x3d7   : > { %v1743_v35 = vpop.eup %1742 }
 0x3d8   : > { %v1186_v29 = vmul.f32 %v1743_v35, %v2352_v45  ;;  %v1185_v53 = vmul.f32 %v1743_v35, %v2350_v40 }
 0x3da   : > { %v1232_v42 = vpack.c.bf16 %v1186_v29, %v1184_v41  ;;  %v1231_v12 = vpack.c.bf16 %v1185_v53, %v1183_v24 }
 0x3dc   : > { %1289 = vmatprep.subr.bf16.mxu1 %v1232_v42 }
 0x3dd   : > { %1290 = vmatpush2.bf16.xpose.msra.mxu1 %v1231_v12 }
 0x3e4   : > { %1292 = vmatmul.mubr.bf16.vlgmr.msra.gmra.mxu1 %v2372_v18 }
 0x444   : > { %v1306_v5 = vpop.permute.xlu0 %1305 }
 0x4a4   : > { %v1293_v16 = vpop.f32.mrf.mxu1 }
 0x4a6   : > { %v1295_v63 = vpop.f32.mrf.mxu1 }
 0x4a7   : > { %1517 = vmatprep.subr.msk.mxu0 %vm207_vm0, %v1295_v63 }
 0x4a8   : > { %v1297_v40 = vpop.f32.mrf.mxu1  ;;  %1518 = vmatpush1.msk.msra.mxu0 %vm207_vm0, %v1293_v16 }
 0x4a9   : > { %1519 = vmatmul.mubr.msk.f32.vlgmr.msra.gmra.mxu0 %vm203_vm1, %v1516_v28 }
 0x4aa   : > { %v1298_v45 = vpop.f32.mrf.mxu1 }
 0x569   : > { %v1384_v18 = vpop.f32.mrf.mxu0 }
 0x56a   : > { %v1385_v14 = vadd.f32 %v1384_v18, %v1306_v5 }
 0x56b   : > { %v1386_v52 = vpop.f32.mrf.mxu0 }
 0x56c   : > { %v1387_v25 = vadd.f32 %v1386_v52, %v1306_v5 }
 0x56e   : > { %v1391_v30 = vcombine.low %v1385_v14, %v1387_v25 }
 0x570   : > { %1393 = vst [vmem:[%s192_s30] sm:$0xff] %v1391_v30 }
 0x571 PF: > { %s13_s14 = sadd.s32 1, %s1766_s14   ;;  %s2535_s12 = smov %s1762_s13 }
 0x572   : > { %p10_p5 = scmp.ge.s32.totalorder %s13_s14, 4   ;;  %s2536_s13 = smov %s2538_s15 }
 0x574   :  { %12 = sbr.rel (!%p10_p5) target bundleno = 2 (0x2), region = 69 }

</bundles_post_ra>
